<compile_context>
chip_gen: v7x
topology: tpu7x:2x2x1
jax: 0.10.0
libtpu: 0.0.40
codegen_flags: <defaults>
</compile_context>

<pallas_src>
import jax
import jax.numpy as jnp
from jax.experimental import pallas as pl
from jax.experimental.pallas import tpu as pltpu

ACTION_DIM = 2
HIDDEN_DIM = 500
STATE_DIM = 382 + 6 + 4  # 392
LOG_STD_MIN = -20.0
LOG_STD_MAX = 2.0

# Padded (lane/sublane friendly) sizes used inside the kernel.
S_PAD = 512      # state features 392 -> 512
H_PAD = 512      # hidden 500 -> 512
HEAD_PAD = 128   # fused head width 2*ACTION_DIM=4 -> 128 (one lane-dense slab)


def _round_up(x, m):
    return ((x + m - 1) // m) * m


def _tile_policy():
    """Batch-tile cap and dual-TensorCore preference from the device kind."""
    cap, two_tc = 256, False
    try:
        kind = jax.devices()[0].device_kind.lower()
        if ("v6" in kind) or ("v7" in kind):
            cap = 512            # 32 MiB default scoped VMEM -> tb=512 fits easily
        two_tc = "v7" in kind    # 2 TensorCores per chip
    except Exception:
        pass
    return cap, two_tc


def _plan_batch(b, cap, prefer_two_steps):
    """Pick (tile, padded_batch, num_steps) with minimal over-pad (<= 8*(n-1) rows)."""
    b8 = _round_up(max(b, 1), 8)
    n = pl.cdiv(b8, cap)
    if prefer_two_steps and b8 >= 256 and n < 2:
        n = 2                    # keep both v7x TensorCores busy for mid-size batches
    tb = _round_up(pl.cdiv(b8, n), 8)
    return tb, n * tb, n


def _policy_kernel(x_ref,
                   w1_ref, b1_ref,
                   w2_ref, b2_ref,
                   wh_ref, bh_ref,
                   out_ref):
    # x is already bf16 (cast fused into the wrapper's pad op).
    x = x_ref[...]

    # linear1 + ReLU (f32 accumulate, bf16 re-cast for the next MXU op)
    h1 = jnp.dot(x, w1_ref[...], preferred_element_type=jnp.float32) + b1_ref[...]
    h1 = jnp.maximum(h1, 0.0).astype(jnp.bfloat16)

    # linear2 + ReLU
    h2 = jnp.dot(h1, w2_ref[...], preferred_element_type=jnp.float32) + b2_ref[...]
    h2 = jnp.maximum(h2, 0.0).astype(jnp.bfloat16)

    # fused heads: cols [0:A) = mean, cols [A:2A) = log_std, rest = zero padding
    head = jnp.dot(h2, wh_ref[...], preferred_element_type=jnp.float32) + bh_ref[...]

    # clamp everything except the mean columns; padded columns are exactly 0,
    # already inside [-20, 2], so a single compare suffices.
    col = jax.lax.broadcasted_iota(jnp.int32, head.shape, 1)
    head = jnp.where(col >= ACTION_DIM,
                     jnp.clip(head, LOG_STD_MIN, LOG_STD_MAX),
                     head)

    out_ref[...] = head.astype(out_ref.dtype)


def _pad2(a, rows, cols, dtype):
    out = jnp.zeros((rows, cols), dtype)
    return out.at[:a.shape[0], :a.shape[1]].set(a.astype(dtype))


def pack_params(params):
    """One-time host-side prep: pad to (8,128)-friendly shapes, weights -> bf16."""
    w1, b1, w2, b2, wm, bm, ws, bs = params
    w1p = _pad2(w1, S_PAD, H_PAD, jnp.bfloat16)
    b1p = _pad2(b1, 1, H_PAD, jnp.float32)
    w2p = _pad2(w2, H_PAD, H_PAD, jnp.bfloat16)
    b2p = _pad2(b2, 1, H_PAD, jnp.float32)
    wh = jnp.concatenate([wm, ws], axis=1)   # (H, 2*A)
    bh = jnp.concatenate([bm, bs], axis=1)   # (1, 2*A)
    whp = _pad2(wh, H_PAD, HEAD_PAD, jnp.bfloat16)
    bhp = _pad2(bh, 1, HEAD_PAD, jnp.float32)
    return (w1p, b1p, w2p, b2p, whp, bhp)


def policy_forward(state, packed_params):
    """state: (B, STATE_DIM) f32 -> (mean (B, ACTION_DIM), log_std (B, ACTION_DIM))."""
    b = state.shape[0]
    w1p, b1p, w2p, b2p, whp, bhp = packed_params

    cap, two_tc = _tile_policy()
    tb, b_pad, n_steps = _plan_batch(b, cap, two_tc)

    # Pad + cast to bf16 in one XLA op (input is fed to the kernel as bf16).
    x = jnp.zeros((b_pad, S_PAD), jnp.bfloat16).at[:b, :STATE_DIM].set(
        state.astype(jnp.bfloat16))

    out = pl.pallas_call(
        _policy_kernel,
        out_shape=jax.ShapeDtypeStruct((b_pad, HEAD_PAD), jnp.bfloat16),
        grid=(n_steps,),
        in_specs=[
            pl.BlockSpec((tb, S_PAD), lambda i: (i, 0)),          # state tile (bf16)
            pl.BlockSpec((S_PAD, H_PAD), lambda i: (0, 0)),       # w1 (VMEM-resident)
            pl.BlockSpec((1, H_PAD), lambda i: (0, 0)),           # b1
            pl.BlockSpec((H_PAD, H_PAD), lambda i: (0, 0)),       # w2 (VMEM-resident)
            pl.BlockSpec((1, H_PAD), lambda i: (0, 0)),           # b2
            pl.BlockSpec((H_PAD, HEAD_PAD), lambda i: (0, 0)),    # fused head w
            pl.BlockSpec((1, HEAD_PAD), lambda i: (0, 0)),        # fused head b
        ],
        out_specs=pl.BlockSpec((tb, HEAD_PAD), lambda i: (i, 0)),
        compiler_params=pltpu.CompilerParams(
            dimension_semantics=("parallel",)),
    )(x, w1p, b1p, w2p, b2p, whp, bhp)

    mean = out[:b, :ACTION_DIM].astype(jnp.float32)
    log_std = out[:b, ACTION_DIM:2 * ACTION_DIM].astype(jnp.float32)
    return mean, log_std


def _xavier_uniform(key, fan_in, fan_out):
    # Matches torch.nn.init.xavier_uniform_ with gain=1 (stored transposed:
    # (in, out) instead of PyTorch's (out, in); bound is symmetric in fan_in/out).
    bound = jnp.sqrt(6.0 / (fan_in + fan_out))
    return jax.random.uniform(key, (fan_in, fan_out), jnp.float32, -bound, bound)


def init_params(key):
    k1, k2, k3, k4 = jax.random.split(key, 4)
    w1 = _xavier_uniform(k1, STATE_DIM, HIDDEN_DIM)
    b1 = jnp.zeros((1, HIDDEN_DIM), jnp.float32)
    w2 = _xavier_uniform(k2, HIDDEN_DIM, HIDDEN_DIM)
    b2 = jnp.zeros((1, HIDDEN_DIM), jnp.float32)
    wm = _xavier_uniform(k3, HIDDEN_DIM, ACTION_DIM)
    bm = jnp.zeros((1, ACTION_DIM), jnp.float32)
    ws = _xavier_uniform(k4, HIDDEN_DIM, ACTION_DIM)
    bs = jnp.zeros((1, ACTION_DIM), jnp.float32)
    return (w1, b1, w2, b2, wm, bm, ws, bs)


def _reference_forward(state, params):
    w1, b1, w2, b2, wm, bm, ws, bs = params
    x = jnp.maximum(state @ w1 + b1, 0.0)
    x = jnp.maximum(x @ w2 + b2, 0.0)
    mean = x @ wm + bm
    log_std = jnp.clip(x @ ws + bs, LOG_STD_MIN, LOG_STD_MAX)
    return mean, log_std


if __name__ == "__main__":
    key = jax.random.PRNGKey(0)
    pkey, skey = jax.random.split(key)

    params = init_params(pkey)
    packed = pack_params(params)

    batch = 2
    state = jax.random.normal(skey, (batch, STATE_DIM), jnp.float32)

    mean, log_std = policy_forward(state, packed)
    jax.block_until_ready((mean, log_std))

    ref_mean, ref_log_std = _reference_forward(state, params)
    assert mean.shape == (batch, ACTION_DIM)
    assert log_std.shape == (batch, ACTION_DIM)
    # bf16 weights/activations (f32 accumulation) -> loosened tolerance.
    assert jnp.allclose(mean, ref_mean, atol=5e-2, rtol=5e-2)
    assert jnp.allclose(log_std, ref_log_std, atol=5e-2, rtol=5e-2)
    assert bool(jnp.all(log_std >= LOG_STD_MIN)) and bool(jnp.all(log_std <= LOG_STD_MAX))

    print("KERNEL_OK")
</pallas_src>

<mosaic_0001>
module attributes {stable_mosaic.version = 11 : i64} {
  func.func @_policy_kernel(%arg0: i32, %arg1: memref<8x512xbf16, #tpu.memory_space<vmem>>, %arg2: memref<512x512xbf16, #tpu.memory_space<vmem>>, %arg3: memref<1x512xf32, #tpu.memory_space<vmem>>, %arg4: memref<512x512xbf16, #tpu.memory_space<vmem>>, %arg5: memref<1x512xf32, #tpu.memory_space<vmem>>, %arg6: memref<512x128xbf16, #tpu.memory_space<vmem>>, %arg7: memref<1x128xf32, #tpu.memory_space<vmem>>, %arg8: memref<8x128xbf16, #tpu.memory_space<vmem>>) attributes {dimension_semantics = [#tpu.dimension_semantics<parallel>], iteration_bounds = array<i64: 1>, scalar_prefetch = 0 : i64, scratch_operands = 0 : i64, tpu.core_type = #tpu.core_type<tc>, window_params = [{transform_indices = @transform_0, window_bounds = array<i64: 8, 512>}, {pipeline_mode = #tpu.pipeline_mode<synchronous>, transform_indices = @transform_1, window_bounds = array<i64: 512, 512>}, {pipeline_mode = #tpu.pipeline_mode<synchronous>, transform_indices = @transform_2, window_bounds = array<i64: 1, 512>}, {pipeline_mode = #tpu.pipeline_mode<synchronous>, transform_indices = @transform_3, window_bounds = array<i64: 512, 512>}, {pipeline_mode = #tpu.pipeline_mode<synchronous>, transform_indices = @transform_4, window_bounds = array<i64: 1, 512>}, {pipeline_mode = #tpu.pipeline_mode<synchronous>, transform_indices = @transform_5, window_bounds = array<i64: 512, 128>}, {pipeline_mode = #tpu.pipeline_mode<synchronous>, transform_indices = @transform_6, window_bounds = array<i64: 1, 128>}, {transform_indices = @transform_7, window_bounds = array<i64: 8, 128>}]} {
    %c0 = arith.constant 0 : index
    %c0_0 = arith.constant 0 : index
    %0 = vector.load %arg1[%c0, %c0_0] : memref<8x512xbf16, #tpu.memory_space<vmem>>, vector<8x512xbf16>
    %c0_1 = arith.constant 0 : index
    %c0_2 = arith.constant 0 : index
    %1 = vector.load %arg2[%c0_1, %c0_2] : memref<512x512xbf16, #tpu.memory_space<vmem>>, vector<512x512xbf16>
    %cst = arith.constant dense<0.000000e+00> : vector<8x512xf32>
    %2 = tpu.matmul %0, %1, %cst {dimension_numbers = #tpu.dot_dimension_numbers<[1], [0], [0], [1], [0, 0, 1, 1], [], []>} : vector<8x512xbf16>, vector<512x512xbf16>, vector<8x512xf32> -> vector<8x512xf32>
    %c0_3 = arith.constant 0 : index
    %c0_4 = arith.constant 0 : index
    %3 = vector.load %arg3[%c0_3, %c0_4] : memref<1x512xf32, #tpu.memory_space<vmem>>, vector<1x512xf32>
    %4 = vector.broadcast %3 : vector<1x512xf32> to vector<8x512xf32>
    %5 = arith.addf %2, %4 : vector<8x512xf32>
    %cst_5 = arith.constant 0.000000e+00 : f32
    %6 = vector.broadcast %cst_5 : f32 to vector<8x512xf32>
    %7 = arith.maximumf %5, %6 : vector<8x512xf32>
    %8 = arith.truncf %7 : vector<8x512xf32> to vector<8x512xbf16>
    %c0_6 = arith.constant 0 : index
    %c0_7 = arith.constant 0 : index
    %9 = vector.load %arg4[%c0_6, %c0_7] : memref<512x512xbf16, #tpu.memory_space<vmem>>, vector<512x512xbf16>
    %cst_8 = arith.constant dense<0.000000e+00> : vector<8x512xf32>
    %10 = tpu.matmul %8, %9, %cst_8 {dimension_numbers = #tpu.dot_dimension_numbers<[1], [0], [0], [1], [0, 0, 1, 1], [], []>} : vector<8x512xbf16>, vector<512x512xbf16>, vector<8x512xf32> -> vector<8x512xf32>
    %c0_9 = arith.constant 0 : index
    %c0_10 = arith.constant 0 : index
    %11 = vector.load %arg5[%c0_9, %c0_10] : memref<1x512xf32, #tpu.memory_space<vmem>>, vector<1x512xf32>
    %12 = vector.broadcast %11 : vector<1x512xf32> to vector<8x512xf32>
    %13 = arith.addf %10, %12 : vector<8x512xf32>
    %cst_11 = arith.constant 0.000000e+00 : f32
    %14 = vector.broadcast %cst_11 : f32 to vector<8x512xf32>
    %15 = arith.maximumf %13, %14 : vector<8x512xf32>
    %16 = arith.truncf %15 : vector<8x512xf32> to vector<8x512xbf16>
    %c0_12 = arith.constant 0 : index
    %c0_13 = arith.constant 0 : index
    %17 = vector.load %arg6[%c0_12, %c0_13] : memref<512x128xbf16, #tpu.memory_space<vmem>>, vector<512x128xbf16>
    %cst_14 = arith.constant dense<0.000000e+00> : vector<8x128xf32>
    %18 = tpu.matmul %16, %17, %cst_14 {dimension_numbers = #tpu.dot_dimension_numbers<[1], [0], [0], [1], [0, 0, 1, 1], [], []>} : vector<8x512xbf16>, vector<512x128xbf16>, vector<8x128xf32> -> vector<8x128xf32>
    %c0_15 = arith.constant 0 : index
    %c0_16 = arith.constant 0 : index
    %19 = vector.load %arg7[%c0_15, %c0_16] : memref<1x128xf32, #tpu.memory_space<vmem>>, vector<1x128xf32>
    %20 = vector.broadcast %19 : vector<1x128xf32> to vector<8x128xf32>
    %21 = arith.addf %18, %20 : vector<8x128xf32>
    %22 = tpu.iota {dimensions = array<i32: 1>} : vector<8x128xi32>
    %c2_i32 = arith.constant 2 : i32
    %23 = vector.broadcast %c2_i32 : i32 to vector<8x128xi32>
    %24 = arith.cmpi sge, %22, %23 : vector<8x128xi32>
    %cst_17 = arith.constant -2.000000e+01 : f32
    %cst_18 = arith.constant 2.000000e+00 : f32
    %25 = vector.broadcast %cst_17 : f32 to vector<8x128xf32>
    %26 = arith.maximumf %25, %21 : vector<8x128xf32>
    %27 = vector.broadcast %cst_18 : f32 to vector<8x128xf32>
    %28 = arith.minimumf %27, %26 : vector<8x128xf32>
    %29 = arith.select %24, %28, %21 : vector<8x128xi1>, vector<8x128xf32>
    %30 = arith.truncf %29 : vector<8x128xf32> to vector<8x128xbf16>
    %c0_19 = arith.constant 0 : index
    %c0_20 = arith.constant 0 : index
    %31 = vector.load %arg8[%c0_19, %c0_20] : memref<8x128xbf16, #tpu.memory_space<vmem>>, vector<8x128xbf16>
    tpu.vector_store %arg8[%c0_19, %c0_20], %30 {strides = array<i32>} : memref<8x128xbf16, #tpu.memory_space<vmem>>, vector<8x128xbf16>,
    return
  }
  func.func @transform_0(%arg0: i32) -> (i32, i32) {
    %c0_i32 = arith.constant 0 : i32
    %c0_i32_0 = arith.constant 0 : i32
    return %arg0, %c0_i32 : i32, i32
  }
  func.func @transform_1(%arg0: i32) -> (i32, i32) {
    %c0_i32 = arith.constant 0 : i32
    %c0_i32_0 = arith.constant 0 : i32
    %c0_i32_1 = arith.constant 0 : i32
    return %c0_i32, %c0_i32_0 : i32, i32
  }
  func.func @transform_2(%arg0: i32) -> (i32, i32) {
    %c0_i32 = arith.constant 0 : i32
    %c0_i32_0 = arith.constant 0 : i32
    %c0_i32_1 = arith.constant 0 : i32
    return %c0_i32, %c0_i32_0 : i32, i32
  }
  func.func @transform_3(%arg0: i32) -> (i32, i32) {
    %c0_i32 = arith.constant 0 : i32
    %c0_i32_0 = arith.constant 0 : i32
    %c0_i32_1 = arith.constant 0 : i32
    return %c0_i32, %c0_i32_0 : i32, i32
  }
  func.func @transform_4(%arg0: i32) -> (i32, i32) {
    %c0_i32 = arith.constant 0 : i32
    %c0_i32_0 = arith.constant 0 : i32
    %c0_i32_1 = arith.constant 0 : i32
    return %c0_i32, %c0_i32_0 : i32, i32
  }
  func.func @transform_5(%arg0: i32) -> (i32, i32) {
    %c0_i32 = arith.constant 0 : i32
    %c0_i32_0 = arith.constant 0 : i32
    %c0_i32_1 = arith.constant 0 : i32
    return %c0_i32, %c0_i32_0 : i32, i32
  }
  func.func @transform_6(%arg0: i32) -> (i32, i32) {
    %c0_i32 = arith.constant 0 : i32
    %c0_i32_0 = arith.constant 0 : i32
    %c0_i32_1 = arith.constant 0 : i32
    return %c0_i32, %c0_i32_0 : i32, i32
  }
  func.func @transform_7(%arg0: i32) -> (i32, i32) {
    %c0_i32 = arith.constant 0 : i32
    %c0_i32_0 = arith.constant 0 : i32
    return %arg0, %c0_i32 : i32, i32
  }
}

</mosaic_0001>

<bundles_post_ra>
// kernel: tpu_custom_call.1
= control target key start
LH: loop header
LB: loop body
LE: loop exit
PB: predicated region body
PF: predicated region fallthrough
CT: control target
= control target key end

     0   :  { %12 = vsyncpa [#allocation3], 0  ;;  %s3460_s0 = inlined_call_operand.hbm [shape: bf16[8,512], index: 0, kind: input, shape index: {}]   ;;  %s3461_s1 = inlined_call_operand.hbm [shape: bf16[512,512], index: 1, kind: input, shape index: {}]   ;;  %s3462_s2 = inlined_call_operand.vmem [shape: f32[1,512], index: 2, kind: input, shape index: {}]   ;;  %s3463_s3 = inlined_call_operand.hbm [shape: bf16[512,512], index: 3, kind: input, shape index: {}]   ;;  %s3464_s4 = inlined_call_operand.vmem [shape: f32[1,512], index: 4, kind: input, shape index: {}]   ;;  %s3465_s5 = inlined_call_operand.hbm [shape: bf16[512,128], index: 5, kind: input, shape index: {}]   ;;  %s3466_s6 = inlined_call_operand.vmem [shape: f32[1,128], index: 6, kind: input, shape index: {}]   ;;  %s3467_s7 = inlined_call_operand.hbm [shape: bf16[8,128], index: 7, kind: output, shape index: {}]  }
   0x1   :  { %13 = vsyncpa [#allocation6], 0 }
   0x2   :  { %14 = vsyncpa [#allocation9], 0 }
   0x3   :  { %15 = vsyncpa [#allocation4], 0  ;;  %s3297_s24 = smov [#allocation5]   ;;  %s3179_s28 = scalar_lea.hbm %s3461_s1, 16384 }
   0x4   :  { %s31_s25 = sshll.u32 %s3297_s24, 4  ;;  %p3180_p0 = scmp.ne.s32.totalorder %s3461_s1, %s3179_s28  ;;  %s32_s25 = int_to_ptr.vmem [resolvable:$true] %s31_s25 }
   0x5   :  { %p3183_p1 = scmp.lt.u32.totalorder %s3179_s28, %s3461_s1 }
   0x7   :  { %p3185_p2 = pnand %p3183_p1, %p3180_p0 }
   0x9   :  { %3188 = shalt.err (!%p3185_p2)
}
   0xa   :  { %s3189_s10 = scalar_lea.vmem %s32_s25, 16384  ;;  %p3194_p4 = scmp.lt.s32.totalorder %s32_s25, %s32_s25 }
   0xb   :  { %p3190_p3 = scmp.ne.s32.totalorder %s32_s25, %s3189_s10  ;;  %p3195_p5 = scmp.lt.s32.totalorder %s3189_s10, %s3189_s10 }
   0xd   :  { %p3196_p6 = por %p3195_p5, %p3194_p4 }
   0xf   :  { %p3197_p7 = pnand %p3196_p6, %p3190_p3 }
  0x11   :  { %3200 = shalt.err (!%p3197_p7)
}
  0x12   :  { %s3298_s11 = smov 256   ;;  %s3299_s12 = smov 16  }
  0x13   :  { %37 = dma.hbm_to_vmem [thread:$0]  %s3461_s1, 16384, %s32_s25, [#allocation6], %s3298_s11, %s3298_s11, %s3299_s12  }
  0x14   :  { %s3300_s15 = smov [#allocation2]   ;;  %s3301_s17 = smov [#allocation7]  }
  0x15   :  { %s22_s16 = sshll.u32 %s3300_s15, 4  ;;  %s45_s18 = sshll.u32 %s3301_s17, 4  ;;  %s23_s16 = int_to_ptr.vmem [resolvable:$true] %s22_s16  ;;  %s46_s18 = int_to_ptr.vmem [resolvable:$true] %s45_s18 }
  0x16   :  { %s3201_s21 = scalar_lea.hbm %s3460_s0, 256 }
  0x17   :  { %p3202_p8 = scmp.ne.s32.totalorder %s3460_s0, %s3201_s21  ;;  %p3205_p9 = scmp.lt.u32.totalorder %s3201_s21, %s3460_s0 }
  0x19   :  { %p3207_p10 = pnand %p3205_p9, %p3202_p8 }
  0x1b   :  { %3210 = shalt.err (!%p3207_p10)
}
  0x1c   :  { %s3211_s1 = scalar_lea.vmem %s23_s16, 256  ;;  %p3216_p12 = scmp.lt.s32.totalorder %s23_s16, %s23_s16 }
  0x1d   :  { %p3212_p11 = scmp.ne.s32.totalorder %s23_s16, %s3211_s1  ;;  %p3217_p13 = scmp.lt.s32.totalorder %s3211_s1, %s3211_s1 }
  0x1f   :  { %p3218_p0 = por %p3217_p13, %p3216_p12 }
  0x21   :  { %p3219_p1 = pnand %p3218_p0, %p3212_p11 }
  0x23   :  { %3222 = shalt.err (!%p3219_p1)
}
  0x24   :  { %25 = dma.hbm_to_vmem [thread:$0]  %s3460_s0, 256, %s23_s16, [#allocation3]  }
  0x25   :  { %s3223_s30 = scalar_lea.hbm %s3463_s3, 16384 }
  0x26   :  { %p3224_p2 = scmp.ne.s32.totalorder %s3463_s3, %s3223_s30  ;;  %p3227_p3 = scmp.lt.u32.totalorder %s3223_s30, %s3463_s3 }
  0x28   :  { %p3229_p4 = pnand %p3227_p3, %p3224_p2 }
  0x2a   :  { %3232 = shalt.err (!%p3229_p4)
}
  0x2b   :  { %s3233_s14 = scalar_lea.vmem %s46_s18, 16384  ;;  %p3238_p6 = scmp.lt.s32.totalorder %s46_s18, %s46_s18 }
  0x2c   :  { %p3234_p5 = scmp.ne.s32.totalorder %s46_s18, %s3233_s14  ;;  %p3239_p7 = scmp.lt.s32.totalorder %s3233_s14, %s3233_s14 }
  0x2e   :  { %p3240_p8 = por %p3239_p7, %p3238_p6 }
  0x30   :  { %p3241_p9 = pnand %p3240_p8, %p3234_p5 }
  0x32   :  { %3244 = shalt.err (!%p3241_p9)
}
  0x33   :  { %51 = dma.hbm_to_vmem [thread:$0]  %s3463_s3, 16384, %s46_s18, [#allocation6], %s3298_s11, %s3298_s11, %s3299_s12  }
  0x34   :  { %s3302_s16 = smov [#allocation8]   ;;  %s3245_s21 = scalar_lea.hbm %s3465_s5, 4096 }
  0x35   :  { %s59_s17 = sshll.u32 %s3302_s16, 4  ;;  %p3246_p10 = scmp.ne.s32.totalorder %s3465_s5, %s3245_s21  ;;  %s60_s17 = int_to_ptr.vmem [resolvable:$true] %s59_s17 }
  0x36   :  { %p3249_p11 = scmp.lt.u32.totalorder %s3245_s21, %s3465_s5 }
  0x38   :  { %p3251_p12 = pnand %p3249_p11, %p3246_p10 }
  0x3a   :  { %3254 = shalt.err (!%p3251_p12)
}
  0x3b   :  { %s3255_s1 = scalar_lea.vmem %s60_s17, 4096  ;;  %p3260_p0 = scmp.lt.s32.totalorder %s60_s17, %s60_s17 }
  0x3c   :  { %p3256_p13 = scmp.ne.s32.totalorder %s60_s17, %s3255_s1  ;;  %p3261_p1 = scmp.lt.s32.totalorder %s3255_s1, %s3255_s1 }
  0x3e   :  { %p3262_p2 = por %p3261_p1, %p3260_p0 }
  0x40   :  { %p3263_p3 = pnand %p3262_p2, %p3256_p13 }
  0x42   :  { %3266 = shalt.err (!%p3263_p3)
}
  0x43   :  { %s3303_s3 = smov 64   ;;  %s3304_s11 = smov 4  }
  0x44   :  { %65 = dma.hbm_to_vmem [thread:$0]  %s3465_s5, 4096, %s60_s17, [#allocation9], %s3303_s3, %s3303_s3, %s3304_s11  }
  0x45   :  { %3289 = dma.done.wait [#allocation3], 256  }
  0x46   :  { %3290 = vsyncadd [#allocation3], 4294967040 }
  0x47   :  { %3291 = dma.done.wait [#allocation6], 32768  }
  0x48   :  { %3292 = vsyncadd [#allocation6], 4294934528 }
  0x49   :  { %3293 = dma.done.wait [#allocation9], 4096  }
  0x4a   :  { %3294 = vsyncadd [#allocation9], 4294963200  ;;  %v2759_v0 = vld [vmem:[#allocation5 + $0x4] ss:$16 sps:$4 sm:$0xff]   ;;  %v2761_v1 = vld [vmem:[#allocation5 + $0xc] ss:$16 sps:$4 sm:$0xff]  }
  0x4b   :  { %887 = vmatprep.subr.bf16.mxu0 %v2759_v0  ;;  %v2763_v2 = vld [vmem:[#allocation5] ss:$16 sps:$4 sm:$0xff]   ;;  %v2764_v3 = vld [vmem:[#allocation5 + $0x8] ss:$16 sps:$4 sm:$0xff]   ;;  %969 = vmatprep.subr.bf16.mxu1 %v2761_v1  ;;  %v2765_v4 = vld [vmem:[#allocation5 + $0x24] ss:$16 sps:$4 sm:$0xff]  }
  0x4c   :  { %888 = vmatpush1.bf16.msra.mxu0 %v2763_v2  ;;  %970 = vmatpush1.bf16.msra.mxu1 %v2764_v3  ;;  %v2767_v5 = vld [vmem:[#allocation5 + $0x2c] ss:$16 sps:$4 sm:$0xff]   ;;  %v2769_v6 = vld [vmem:[#allocation5 + $0x20] ss:$16 sps:$4 sm:$0xff]   ;;  %v2770_v7 = vld [vmem:[#allocation5 + $0x28] ss:$16 sps:$4 sm:$0xff]  }
  0x4d   :  { %889 = vmatprep.subr.bf16.mxu0 %v2765_v4  ;;  %971 = vmatprep.subr.bf16.mxu1 %v2767_v5  ;;  %v2771_v8 = vld [vmem:[#allocation5 + $0x44] ss:$16 sps:$4 sm:$0xff]   ;;  %v2773_v9 = vld [vmem:[#allocation5 + $0x4c] ss:$16 sps:$4 sm:$0xff]   ;;  %v2775_v10 = vld [vmem:[#allocation5 + $0x40] ss:$16 sps:$4 sm:$0xff]  }
  0x4e   :  { %v2776_v11 = vld [vmem:[#allocation5 + $0x48] ss:$16 sps:$4 sm:$0xff]   ;;  %v2777_v12 = vld [vmem:[#allocation5 + $0x64] ss:$16 sps:$4 sm:$0xff]   ;;  %v2779_v13 = vld [vmem:[#allocation5 + $0x6c] ss:$16 sps:$4 sm:$0xff]  }
  0x4f   :  { %v2781_v14 = vld [vmem:[#allocation5 + $0x60] ss:$16 sps:$4 sm:$0xff]   ;;  %v2782_v15 = vld [vmem:[#allocation5 + $0x68] ss:$16 sps:$4 sm:$0xff]   ;;  %v2783_v16 = vld [vmem:[#allocation5 + $0x84] ss:$16 sps:$4 sm:$0xff]  }
  0x50   :  { %890 = vmatpush1.bf16.msra.mxu0 %v2769_v6  ;;  %972 = vmatpush1.bf16.msra.mxu1 %v2770_v7  ;;  %v2785_v17 = vld [vmem:[#allocation5 + $0x8c] ss:$16 sps:$4 sm:$0xff]   ;;  %v2787_v18 = vld [vmem:[#allocation5 + $0x80] ss:$16 sps:$4 sm:$0xff]   ;;  %v2788_v19 = vld [vmem:[#allocation5 + $0x88] ss:$16 sps:$4 sm:$0xff]  }
  0x51   :  { %891 = vmatprep.subr.bf16.mxu0 %v2771_v8  ;;  %973 = vmatprep.subr.bf16.mxu1 %v2773_v9  ;;  %v2789_v20 = vld [vmem:[#allocation5 + $0xa4] ss:$16 sps:$4 sm:$0xff]   ;;  %v2791_v21 = vld [vmem:[#allocation5 + $0xac] ss:$16 sps:$4 sm:$0xff]   ;;  %v2793_v22 = vld [vmem:[#allocation5 + $0xa0] ss:$16 sps:$4 sm:$0xff]  }
  0x52   :  { %v2794_v23 = vld [vmem:[#allocation5 + $0xa8] ss:$16 sps:$4 sm:$0xff]   ;;  %v2795_v24 = vld [vmem:[#allocation5 + $0xc4] ss:$16 sps:$4 sm:$0xff]   ;;  %v2797_v25 = vld [vmem:[#allocation5 + $0xcc] ss:$16 sps:$4 sm:$0xff]  }
  0x53   :  { %v2799_v26 = vld [vmem:[#allocation5 + $0xc0] ss:$16 sps:$4 sm:$0xff]   ;;  %v2800_v27 = vld [vmem:[#allocation5 + $0xc8] ss:$16 sps:$4 sm:$0xff]   ;;  %v2801_v28 = vld [vmem:[#allocation5 + $0xe4] ss:$16 sps:$4 sm:$0xff]  }
  0x54   :  { %892 = vmatpush1.bf16.msra.mxu0 %v2775_v10  ;;  %974 = vmatpush1.bf16.msra.mxu1 %v2776_v11  ;;  %v2803_v29 = vld [vmem:[#allocation5 + $0xec] ss:$16 sps:$4 sm:$0xff]   ;;  %v2805_v30 = vld [vmem:[#allocation5 + $0xe0] ss:$16 sps:$4 sm:$0xff]   ;;  %v2806_v31 = vld [vmem:[#allocation5 + $0xe8] ss:$16 sps:$4 sm:$0xff]  }
  0x55   :  { %893 = vmatprep.subr.bf16.mxu0 %v2777_v12  ;;  %975 = vmatprep.subr.bf16.mxu1 %v2779_v13  ;;  %v2807_v32 = vld [vmem:[#allocation5 + $0x104] ss:$16 sps:$4 sm:$0xff]   ;;  %v2809_v33 = vld [vmem:[#allocation5 + $0x10c] ss:$16 sps:$4 sm:$0xff]   ;;  %v2811_v34 = vld [vmem:[#allocation5 + $0x100] ss:$16 sps:$4 sm:$0xff]  }
  0x56   :  { %v2812_v35 = vld [vmem:[#allocation5 + $0x108] ss:$16 sps:$4 sm:$0xff]   ;;  %v2813_v36 = vld [vmem:[#allocation5 + $0x124] ss:$16 sps:$4 sm:$0xff]   ;;  %v2815_v37 = vld [vmem:[#allocation5 + $0x12c] ss:$16 sps:$4 sm:$0xff]  }
  0x57   :  { %v2817_v38 = vld [vmem:[#allocation5 + $0x120] ss:$16 sps:$4 sm:$0xff]   ;;  %v2818_v39 = vld [vmem:[#allocation5 + $0x128] ss:$16 sps:$4 sm:$0xff]   ;;  %v2819_v40 = vld [vmem:[#allocation5 + $0x144] ss:$16 sps:$4 sm:$0xff]  }
  0x58   :  { %894 = vmatpush1.bf16.msra.mxu0 %v2781_v14  ;;  %976 = vmatpush1.bf16.msra.mxu1 %v2782_v15  ;;  %v2821_v41 = vld [vmem:[#allocation5 + $0x14c] ss:$16 sps:$4 sm:$0xff]   ;;  %v2823_v42 = vld [vmem:[#allocation5 + $0x140] ss:$16 sps:$4 sm:$0xff]   ;;  %v2824_v43 = vld [vmem:[#allocation5 + $0x148] ss:$16 sps:$4 sm:$0xff]  }
  0x59   :  { %895 = vmatprep.subr.bf16.mxu0 %v2783_v16  ;;  %977 = vmatprep.subr.bf16.mxu1 %v2785_v17  ;;  %v2825_v44 = vld [vmem:[#allocation5 + $0x164] ss:$16 sps:$4 sm:$0xff]   ;;  %v2827_v45 = vld [vmem:[#allocation5 + $0x16c] ss:$16 sps:$4 sm:$0xff]   ;;  %v2829_v47 = vld [vmem:[#allocation5 + $0x160] ss:$16 sps:$4 sm:$0xff]  }
  0x5a   :  { %v81_v46 = vld [vmem:[#allocation2] sm:$0xff]  ;;  %v2830_v49 = vld [vmem:[#allocation5 + $0x168] ss:$16 sps:$4 sm:$0xff]   ;;  %v2833_v51 = vld [vmem:[#allocation5 + $0x18c] ss:$16 sps:$4 sm:$0xff]   ;;  %s3305_s29 = smov [#allocation10]  }
  0x5b   :  { %v2390_v48 = vcombine.high %v81_v46, %v81_v46  ;;  %v2831_v50 = vld [vmem:[#allocation5 + $0x184] ss:$16 sps:$4 sm:$0xff]   ;;  %v2835_v52 = vld [vmem:[#allocation5 + $0x180] ss:$16 sps:$4 sm:$0xff]   ;;  %v2836_v53 = vld [vmem:[#allocation5 + $0x188] ss:$16 sps:$4 sm:$0xff]   ;;  %v2389_v4 = vcombine.low %v81_v46, %v81_v46 }
  0x5c   :  { %896 = vmatpush1.bf16.msra.mxu0 %v2787_v18  ;;  %978 = vmatpush1.bf16.msra.mxu1 %v2788_v19  ;;  %v2837_v54 = vld [vmem:[#allocation5 + $0x1a4] ss:$16 sps:$4 sm:$0xff]   ;;  %v2839_v55 = vld [vmem:[#allocation5 + $0x1ac] ss:$16 sps:$4 sm:$0xff]   ;;  %v2841_v56 = vld [vmem:[#allocation5 + $0x1a0] ss:$16 sps:$4 sm:$0xff]  }
  0x5d   :  { %897 = vmatprep.subr.bf16.mxu0 %v2789_v20  ;;  %979 = vmatprep.subr.bf16.mxu1 %v2791_v21  ;;  %v2842_v57 = vld [vmem:[#allocation5 + $0x1a8] ss:$16 sps:$4 sm:$0xff]   ;;  %v2843_v58 = vld [vmem:[#allocation5 + $0x1c4] ss:$16 sps:$4 sm:$0xff]   ;;  %v2845_v59 = vld [vmem:[#allocation5 + $0x1cc] ss:$16 sps:$4 sm:$0xff]  }
  0x5e   :  { %919 = vmatprep.mubr.bf16.mxu0 %v2390_v48  ;;  %1001 = vmatprep.mubr.bf16.mxu1 %v2390_v48  ;;  %v2847_v60 = vld [vmem:[#allocation5 + $0x1c0] ss:$16 sps:$4 sm:$0xff]   ;;  %v2848_v61 = vld [vmem:[#allocation5 + $0x1c8] ss:$16 sps:$4 sm:$0xff]   ;;  %v2849_v62 = vld [vmem:[#allocation5 + $0x1e4] ss:$16 sps:$4 sm:$0xff]  }
  0x5f   :  { %v2851_v63 = vld [vmem:[#allocation5 + $0x1ec] ss:$16 sps:$4 sm:$0xff]   ;;  %v2853_v0 = vld [vmem:[#allocation5 + $0x1e0] ss:$16 sps:$4 sm:$0xff]   ;;  %v2854_v1 = vld [vmem:[#allocation5 + $0x1e8] ss:$16 sps:$4 sm:$0xff]  }
  0x60   :  { %898 = vmatpush1.bf16.msra.mxu0 %v2793_v22  ;;  %980 = vmatpush1.bf16.msra.mxu1 %v2794_v23  ;;  %v2859_v2 = vld [vmem:[#allocation5 + $0x204] ss:$16 sps:$4 sm:$0xff]   ;;  %v2862_v3 = vld [vmem:[#allocation5 + $0x20c] ss:$16 sps:$4 sm:$0xff]   ;;  %v2857_v5 = vld [vmem:[#allocation5 + $0x200] ss:$16 sps:$4 sm:$0xff]  }
  0x61   :  { %899 = vmatprep.subr.bf16.mxu0 %v2795_v24  ;;  %981 = vmatprep.subr.bf16.mxu1 %v2797_v25  ;;  %v2860_v6 = vld [vmem:[#allocation5 + $0x208] ss:$16 sps:$4 sm:$0xff]   ;;  %v2865_v7 = vld [vmem:[#allocation5 + $0x224] ss:$16 sps:$4 sm:$0xff]   ;;  %v2868_v8 = vld [vmem:[#allocation5 + $0x22c] ss:$16 sps:$4 sm:$0xff]  }
  0x62   :  { %v2863_v9 = vld [vmem:[#allocation5 + $0x220] ss:$16 sps:$4 sm:$0xff]   ;;  %v2866_v10 = vld [vmem:[#allocation5 + $0x228] ss:$16 sps:$4 sm:$0xff]   ;;  %v2871_v11 = vld [vmem:[#allocation5 + $0x244] ss:$16 sps:$4 sm:$0xff]  }
  0x63   :  { %v2874_v12 = vld [vmem:[#allocation5 + $0x24c] ss:$16 sps:$4 sm:$0xff]   ;;  %v2869_v13 = vld [vmem:[#allocation5 + $0x240] ss:$16 sps:$4 sm:$0xff]   ;;  %v2872_v14 = vld [vmem:[#allocation5 + $0x248] ss:$16 sps:$4 sm:$0xff]  }
  0x64   :  { %900 = vmatpush1.bf16.msra.mxu0 %v2799_v26  ;;  %982 = vmatpush1.bf16.msra.mxu1 %v2800_v27  ;;  %v2877_v15 = vld [vmem:[#allocation5 + $0x264] ss:$16 sps:$4 sm:$0xff]   ;;  %v2880_v16 = vld [vmem:[#allocation5 + $0x26c] ss:$16 sps:$4 sm:$0xff]   ;;  %v2875_v17 = vld [vmem:[#allocation5 + $0x260] ss:$16 sps:$4 sm:$0xff]  }
  0x65   :  { %901 = vmatprep.subr.bf16.mxu0 %v2801_v28  ;;  %983 = vmatprep.subr.bf16.mxu1 %v2803_v29  ;;  %v2878_v18 = vld [vmem:[#allocation5 + $0x268] ss:$16 sps:$4 sm:$0xff]   ;;  %v2883_v19 = vld [vmem:[#allocation5 + $0x284] ss:$16 sps:$4 sm:$0xff]   ;;  %v2886_v20 = vld [vmem:[#allocation5 + $0x28c] ss:$16 sps:$4 sm:$0xff]  }
  0x66   :  { %v2881_v21 = vld [vmem:[#allocation5 + $0x280] ss:$16 sps:$4 sm:$0xff]   ;;  %v2884_v22 = vld [vmem:[#allocation5 + $0x288] ss:$16 sps:$4 sm:$0xff]   ;;  %v2889_v23 = vld [vmem:[#allocation5 + $0x2a4] ss:$16 sps:$4 sm:$0xff]  }
  0x67   :  { %v2892_v24 = vld [vmem:[#allocation5 + $0x2ac] ss:$16 sps:$4 sm:$0xff]   ;;  %v2887_v25 = vld [vmem:[#allocation5 + $0x2a0] ss:$16 sps:$4 sm:$0xff]   ;;  %v2890_v26 = vld [vmem:[#allocation5 + $0x2a8] ss:$16 sps:$4 sm:$0xff]  }
  0x68   :  { %902 = vmatpush1.bf16.msra.mxu0 %v2805_v30  ;;  %984 = vmatpush1.bf16.msra.mxu1 %v2806_v31  ;;  %v2895_v27 = vld [vmem:[#allocation5 + $0x2c4] ss:$16 sps:$4 sm:$0xff]   ;;  %v2898_v28 = vld [vmem:[#allocation5 + $0x2cc] ss:$16 sps:$4 sm:$0xff]   ;;  %v2893_v31 = vld [vmem:[#allocation5 + $0x2c0] ss:$16 sps:$4 sm:$0xff]  }
  0x69   :  { %903 = vmatprep.subr.bf16.mxu0 %v2807_v32  ;;  %985 = vmatprep.subr.bf16.mxu1 %v2809_v33  ;;  %v3400_v29 = vld [vmem:[#allocation2 + $0x8] sm:$0xff]  ;;  %v2901_v33 = vld [vmem:[#allocation5 + $0x2e4] ss:$16 sps:$4 sm:$0xff]   ;;  %s2378_s30 = sshll.u32 %s3305_s29, 4  ;;  %s2379_s30 = int_to_ptr.vmem [resolvable:$true] %s2378_s30 }
  0x6a   :  { %v2392_v30 = vcombine.high %v3400_v29, %v3400_v29  ;;  %v2896_v32 = vld [vmem:[#allocation5 + $0x2c8] ss:$16 sps:$4 sm:$0xff]   ;;  %v2922_v46 = vld [vmem:[#allocation5 + $0x34c] ss:$16 sps:$4 sm:$0xff]   ;;  %p3272_p5 = scmp.lt.s32.totalorder %s2379_s30, %s2379_s30 }
  0x6b   :  { %v2920_v48 = vld [vmem:[#allocation5 + $0x348] ss:$16 sps:$4 sm:$0xff]  }
  0x6c   :  { %904 = vmatpush1.bf16.msra.mxu0 %v2811_v34  ;;  %986 = vmatpush1.bf16.msra.mxu1 %v2812_v35  ;;  %v2904_v34 = vld [vmem:[#allocation5 + $0x2ec] ss:$16 sps:$4 sm:$0xff]   ;;  %v2899_v35 = vld [vmem:[#allocation5 + $0x2e0] ss:$16 sps:$4 sm:$0xff]  }
  0x6d   :  { %905 = vmatprep.subr.bf16.mxu0 %v2813_v36  ;;  %987 = vmatprep.subr.bf16.mxu1 %v2815_v37  ;;  %v2902_v36 = vld [vmem:[#allocation5 + $0x2e8] ss:$16 sps:$4 sm:$0xff]   ;;  %v2907_v37 = vld [vmem:[#allocation5 + $0x304] ss:$16 sps:$4 sm:$0xff]  }
  0x70   :  { %906 = vmatpush1.bf16.msra.mxu0 %v2817_v38  ;;  %988 = vmatpush1.bf16.msra.mxu1 %v2818_v39  ;;  %v2910_v38 = vld [vmem:[#allocation5 + $0x30c] ss:$16 sps:$4 sm:$0xff]   ;;  %v2905_v39 = vld [vmem:[#allocation5 + $0x300] ss:$16 sps:$4 sm:$0xff]  }
  0x71   :  { %907 = vmatprep.subr.bf16.mxu0 %v2819_v40  ;;  %989 = vmatprep.subr.bf16.mxu1 %v2821_v41  ;;  %v2908_v40 = vld [vmem:[#allocation5 + $0x308] ss:$16 sps:$4 sm:$0xff]   ;;  %v2913_v41 = vld [vmem:[#allocation5 + $0x324] ss:$16 sps:$4 sm:$0xff]  }
  0x74   :  { %908 = vmatpush1.bf16.msra.mxu0 %v2823_v42  ;;  %990 = vmatpush1.bf16.msra.mxu1 %v2824_v43  ;;  %v2916_v42 = vld [vmem:[#allocation5 + $0x32c] ss:$16 sps:$4 sm:$0xff]   ;;  %v2911_v43 = vld [vmem:[#allocation5 + $0x320] ss:$16 sps:$4 sm:$0xff]  }
  0x75   :  { %909 = vmatprep.subr.bf16.mxu0 %v2825_v44  ;;  %991 = vmatprep.subr.bf16.mxu1 %v2827_v45  ;;  %v2914_v44 = vld [vmem:[#allocation5 + $0x328] ss:$16 sps:$4 sm:$0xff]   ;;  %v2919_v45 = vld [vmem:[#allocation5 + $0x344] ss:$16 sps:$4 sm:$0xff]  }
  0x78   :  { %910 = vmatpush1.bf16.msra.mxu0 %v2829_v47  ;;  %992 = vmatpush1.bf16.msra.mxu1 %v2830_v49  ;;  %v2917_v47 = vld [vmem:[#allocation5 + $0x340] ss:$16 sps:$4 sm:$0xff]   ;;  %v2925_v49 = vld [vmem:[#allocation5 + $0x364] ss:$16 sps:$4 sm:$0xff]  }
  0x79   :  { %911 = vmatprep.subr.bf16.mxu0 %v2831_v50  ;;  %993 = vmatprep.subr.bf16.mxu1 %v2833_v51  ;;  %v2928_v50 = vld [vmem:[#allocation5 + $0x36c] ss:$16 sps:$4 sm:$0xff]   ;;  %v2923_v51 = vld [vmem:[#allocation5 + $0x360] ss:$16 sps:$4 sm:$0xff]  }
  0x7c   :  { %912 = vmatpush1.bf16.msra.mxu0 %v2835_v52  ;;  %994 = vmatpush1.bf16.msra.mxu1 %v2836_v53  ;;  %v2926_v52 = vld [vmem:[#allocation5 + $0x368] ss:$16 sps:$4 sm:$0xff]   ;;  %v2931_v53 = vld [vmem:[#allocation5 + $0x384] ss:$16 sps:$4 sm:$0xff]  }
  0x7d   :  { %913 = vmatprep.subr.bf16.mxu0 %v2837_v54  ;;  %995 = vmatprep.subr.bf16.mxu1 %v2839_v55  ;;  %v2934_v54 = vld [vmem:[#allocation5 + $0x38c] ss:$16 sps:$4 sm:$0xff]   ;;  %v2929_v55 = vld [vmem:[#allocation5 + $0x380] ss:$16 sps:$4 sm:$0xff]  }
  0x80   :  { %914 = vmatpush1.bf16.msra.mxu0 %v2841_v56  ;;  %996 = vmatpush1.bf16.msra.mxu1 %v2842_v57  ;;  %v2932_v56 = vld [vmem:[#allocation5 + $0x388] ss:$16 sps:$4 sm:$0xff]   ;;  %v2937_v57 = vld [vmem:[#allocation5 + $0x3a4] ss:$16 sps:$4 sm:$0xff]  }
  0x81   :  { %915 = vmatprep.subr.bf16.mxu0 %v2843_v58  ;;  %997 = vmatprep.subr.bf16.mxu1 %v2845_v59  ;;  %v2940_v58 = vld [vmem:[#allocation5 + $0x3ac] ss:$16 sps:$4 sm:$0xff]   ;;  %v2935_v59 = vld [vmem:[#allocation5 + $0x3a0] ss:$16 sps:$4 sm:$0xff]  }
  0x84   :  { %916 = vmatpush1.bf16.msra.mxu0 %v2847_v60  ;;  %998 = vmatpush1.bf16.msra.mxu1 %v2848_v61  ;;  %v2938_v60 = vld [vmem:[#allocation5 + $0x3a8] ss:$16 sps:$4 sm:$0xff]   ;;  %v2943_v61 = vld [vmem:[#allocation5 + $0x3c4] ss:$16 sps:$4 sm:$0xff]  }
  0x85   :  { %917 = vmatprep.subr.bf16.mxu0 %v2849_v62  ;;  %999 = vmatprep.subr.bf16.mxu1 %v2851_v63  ;;  %v2946_v62 = vld [vmem:[#allocation5 + $0x3cc] ss:$16 sps:$4 sm:$0xff]   ;;  %v2941_v63 = vld [vmem:[#allocation5 + $0x3c0] ss:$16 sps:$4 sm:$0xff]  }
  0x88   :  { %918 = vmatpush1.bf16.msra.mxu0 %v2853_v0  ;;  %1000 = vmatpush1.bf16.msra.mxu1 %v2854_v1  ;;  %v2944_v0 = vld [vmem:[#allocation5 + $0x3c8] ss:$16 sps:$4 sm:$0xff]   ;;  %v2949_v1 = vld [vmem:[#allocation5 + $0x3e4] ss:$16 sps:$4 sm:$0xff]  }
  0x89   :  { %928 = vmatprep.subr.bf16.mxu0 %v2859_v2  ;;  %1010 = vmatprep.subr.bf16.mxu1 %v2862_v3  ;;  %v2952_v2 = vld [vmem:[#allocation5 + $0x3ec] ss:$16 sps:$4 sm:$0xff]   ;;  %v2947_v3 = vld [vmem:[#allocation5 + $0x3e0] ss:$16 sps:$4 sm:$0xff]  }
  0x8b   :  { %920 = vmatmul.mubr.bf16.vlgmr.msra.gmra.mrb[0].mxu0 %v2389_v4  ;;  %1002 = vmatmul.mubr.bf16.vlgmr.msra.gmra.mrb[0].mxu1 %v2389_v4  ;;  %v2950_v4 = vld [vmem:[#allocation5 + $0x3e8] ss:$16 sps:$4 sm:$0xff]  }
  0x8c   :  { %929 = vmatpush1.bf16.msra.mxu0 %v2857_v5  ;;  %1011 = vmatpush1.bf16.msra.mxu1 %v2860_v6  ;;  %v2957_v5 = vld [vmem:[#allocation7 + $0x4] ss:$16 sps:$4 sm:$0xff]   ;;  %v2960_v6 = vld [vmem:[#allocation7 + $0xc] ss:$16 sps:$4 sm:$0xff]  }
  0x8d   :  { %930 = vmatprep.subr.bf16.mxu0 %v2865_v7  ;;  %1012 = vmatprep.subr.bf16.mxu1 %v2868_v8  ;;  %v2955_v7 = vld [vmem:[#allocation7] ss:$16 sps:$4 sm:$0xff]   ;;  %v2958_v8 = vld [vmem:[#allocation7 + $0x8] ss:$16 sps:$4 sm:$0xff]  }
  0x8e   :  { %960 = vmatprep.mubr.bf16.mxu0 %v2392_v30  ;;  %1042 = vmatprep.mubr.bf16.mxu1 %v2392_v30  ;;  %v2993_v30 = vld [vmem:[#allocation7 + $0xc4] ss:$16 sps:$4 sm:$0xff]  }
  0x90   :  { %931 = vmatpush1.bf16.msra.mxu0 %v2863_v9  ;;  %1013 = vmatpush1.bf16.msra.mxu1 %v2866_v10  ;;  %v2391_v9 = vcombine.low %v3400_v29, %v3400_v29  ;;  %v2963_v10 = vld [vmem:[#allocation7 + $0x24] ss:$16 sps:$4 sm:$0xff]   ;;  %v2988_v29 = vld [vmem:[#allocation7 + $0xa8] ss:$16 sps:$4 sm:$0xff]  }
  0x91   :  { %932 = vmatprep.subr.bf16.mxu0 %v2871_v11  ;;  %1014 = vmatprep.subr.bf16.mxu1 %v2874_v12  ;;  %v2966_v11 = vld [vmem:[#allocation7 + $0x2c] ss:$16 sps:$4 sm:$0xff]   ;;  %v2961_v12 = vld [vmem:[#allocation7 + $0x20] ss:$16 sps:$4 sm:$0xff]  }
  0x94   :  { %933 = vmatpush1.bf16.msra.mxu0 %v2869_v13  ;;  %1015 = vmatpush1.bf16.msra.mxu1 %v2872_v14  ;;  %v2964_v13 = vld [vmem:[#allocation7 + $0x28] ss:$16 sps:$4 sm:$0xff]   ;;  %v2969_v14 = vld [vmem:[#allocation7 + $0x44] ss:$16 sps:$4 sm:$0xff]  }
  0x95   :  { %934 = vmatprep.subr.bf16.mxu0 %v2877_v15  ;;  %1016 = vmatprep.subr.bf16.mxu1 %v2880_v16  ;;  %v2972_v15 = vld [vmem:[#allocation7 + $0x4c] ss:$16 sps:$4 sm:$0xff]   ;;  %v2967_v16 = vld [vmem:[#allocation7 + $0x40] ss:$16 sps:$4 sm:$0xff]  }
  0x98   :  { %935 = vmatpush1.bf16.msra.mxu0 %v2875_v17  ;;  %1017 = vmatpush1.bf16.msra.mxu1 %v2878_v18  ;;  %v2970_v17 = vld [vmem:[#allocation7 + $0x48] ss:$16 sps:$4 sm:$0xff]   ;;  %v2975_v18 = vld [vmem:[#allocation7 + $0x64] ss:$16 sps:$4 sm:$0xff]  }
  0x99   :  { %936 = vmatprep.subr.bf16.mxu0 %v2883_v19  ;;  %1018 = vmatprep.subr.bf16.mxu1 %v2886_v20  ;;  %v2978_v19 = vld [vmem:[#allocation7 + $0x6c] ss:$16 sps:$4 sm:$0xff]   ;;  %v2973_v20 = vld [vmem:[#allocation7 + $0x60] ss:$16 sps:$4 sm:$0xff]  }
  0x9c   :  { %937 = vmatpush1.bf16.msra.mxu0 %v2881_v21  ;;  %1019 = vmatpush1.bf16.msra.mxu1 %v2884_v22  ;;  %v2976_v21 = vld [vmem:[#allocation7 + $0x68] ss:$16 sps:$4 sm:$0xff]   ;;  %v2981_v22 = vld [vmem:[#allocation7 + $0x84] ss:$16 sps:$4 sm:$0xff]  }
  0x9d   :  { %938 = vmatprep.subr.bf16.mxu0 %v2889_v23  ;;  %1020 = vmatprep.subr.bf16.mxu1 %v2892_v24  ;;  %v2984_v23 = vld [vmem:[#allocation7 + $0x8c] ss:$16 sps:$4 sm:$0xff]   ;;  %v2979_v24 = vld [vmem:[#allocation7 + $0x80] ss:$16 sps:$4 sm:$0xff]  }
  0xa0   :  { %939 = vmatpush1.bf16.msra.mxu0 %v2887_v25  ;;  %1021 = vmatpush1.bf16.msra.mxu1 %v2890_v26  ;;  %v2982_v25 = vld [vmem:[#allocation7 + $0x88] ss:$16 sps:$4 sm:$0xff]   ;;  %v2987_v26 = vld [vmem:[#allocation7 + $0xa4] ss:$16 sps:$4 sm:$0xff]  }
  0xa1   :  { %940 = vmatprep.subr.bf16.mxu0 %v2895_v27  ;;  %1022 = vmatprep.subr.bf16.mxu1 %v2898_v28  ;;  %v2990_v27 = vld [vmem:[#allocation7 + $0xac] ss:$16 sps:$4 sm:$0xff]   ;;  %v2985_v28 = vld [vmem:[#allocation7 + $0xa0] ss:$16 sps:$4 sm:$0xff]  }
  0xa4   :  { %941 = vmatpush1.bf16.msra.mxu0 %v2893_v31  ;;  %1023 = vmatpush1.bf16.msra.mxu1 %v2896_v32  ;;  %v2996_v31 = vld [vmem:[#allocation7 + $0xcc] ss:$16 sps:$4 sm:$0xff]   ;;  %v2991_v32 = vld [vmem:[#allocation7 + $0xc0] ss:$16 sps:$4 sm:$0xff]  }
  0xa5   :  { %942 = vmatprep.subr.bf16.mxu0 %v2901_v33  ;;  %1024 = vmatprep.subr.bf16.mxu1 %v2904_v34  ;;  %v2994_v33 = vld [vmem:[#allocation7 + $0xc8] ss:$16 sps:$4 sm:$0xff]   ;;  %v2999_v34 = vld [vmem:[#allocation7 + $0xe4] ss:$16 sps:$4 sm:$0xff]  }
  0xa8   :  { %943 = vmatpush1.bf16.msra.mxu0 %v2899_v35  ;;  %1025 = vmatpush1.bf16.msra.mxu1 %v2902_v36  ;;  %v3002_v35 = vld [vmem:[#allocation7 + $0xec] ss:$16 sps:$4 sm:$0xff]   ;;  %v2997_v36 = vld [vmem:[#allocation7 + $0xe0] ss:$16 sps:$4 sm:$0xff]  }
  0xa9   :  { %944 = vmatprep.subr.bf16.mxu0 %v2907_v37  ;;  %1026 = vmatprep.subr.bf16.mxu1 %v2910_v38  ;;  %v3000_v37 = vld [vmem:[#allocation7 + $0xe8] ss:$16 sps:$4 sm:$0xff]   ;;  %v3005_v38 = vld [vmem:[#allocation7 + $0x104] ss:$16 sps:$4 sm:$0xff]  }
  0xac   :  { %945 = vmatpush1.bf16.msra.mxu0 %v2905_v39  ;;  %1027 = vmatpush1.bf16.msra.mxu1 %v2908_v40  ;;  %v3008_v39 = vld [vmem:[#allocation7 + $0x10c] ss:$16 sps:$4 sm:$0xff]   ;;  %v3003_v40 = vld [vmem:[#allocation7 + $0x100] ss:$16 sps:$4 sm:$0xff]  }
  0xad   :  { %946 = vmatprep.subr.bf16.mxu0 %v2913_v41  ;;  %1028 = vmatprep.subr.bf16.mxu1 %v2916_v42  ;;  %v3006_v41 = vld [vmem:[#allocation7 + $0x108] ss:$16 sps:$4 sm:$0xff]   ;;  %v3011_v42 = vld [vmem:[#allocation7 + $0x124] ss:$16 sps:$4 sm:$0xff]  }
  0xb0   :  { %947 = vmatpush1.bf16.msra.mxu0 %v2911_v43  ;;  %1029 = vmatpush1.bf16.msra.mxu1 %v2914_v44  ;;  %v3014_v43 = vld [vmem:[#allocation7 + $0x12c] ss:$16 sps:$4 sm:$0xff]   ;;  %v3009_v44 = vld [vmem:[#allocation7 + $0x120] ss:$16 sps:$4 sm:$0xff]  }
  0xb1   :  { %948 = vmatprep.subr.bf16.mxu0 %v2919_v45  ;;  %1030 = vmatprep.subr.bf16.mxu1 %v2922_v46  ;;  %v3012_v45 = vld [vmem:[#allocation7 + $0x128] ss:$16 sps:$4 sm:$0xff]   ;;  %v3017_v46 = vld [vmem:[#allocation7 + $0x144] ss:$16 sps:$4 sm:$0xff]  }
  0xb4   :  { %949 = vmatpush1.bf16.msra.mxu0 %v2917_v47  ;;  %1031 = vmatpush1.bf16.msra.mxu1 %v2920_v48  ;;  %v3020_v47 = vld [vmem:[#allocation7 + $0x14c] ss:$16 sps:$4 sm:$0xff]   ;;  %v3015_v48 = vld [vmem:[#allocation7 + $0x140] ss:$16 sps:$4 sm:$0xff]  }
  0xb5   :  { %950 = vmatprep.subr.bf16.mxu0 %v2925_v49  ;;  %1032 = vmatprep.subr.bf16.mxu1 %v2928_v50  ;;  %v3018_v49 = vld [vmem:[#allocation7 + $0x148] ss:$16 sps:$4 sm:$0xff]   ;;  %v3023_v50 = vld [vmem:[#allocation7 + $0x164] ss:$16 sps:$4 sm:$0xff]  }
  0xb8   :  { %951 = vmatpush1.bf16.msra.mxu0 %v2923_v51  ;;  %1033 = vmatpush1.bf16.msra.mxu1 %v2926_v52  ;;  %v3026_v51 = vld [vmem:[#allocation7 + $0x16c] ss:$16 sps:$4 sm:$0xff]   ;;  %v3021_v52 = vld [vmem:[#allocation7 + $0x160] ss:$16 sps:$4 sm:$0xff]  }
  0xb9   :  { %952 = vmatprep.subr.bf16.mxu0 %v2931_v53  ;;  %1034 = vmatprep.subr.bf16.mxu1 %v2934_v54  ;;  %v3024_v53 = vld [vmem:[#allocation7 + $0x168] ss:$16 sps:$4 sm:$0xff]   ;;  %v3029_v54 = vld [vmem:[#allocation7 + $0x184] ss:$16 sps:$4 sm:$0xff]  }
  0xbc   :  { %953 = vmatpush1.bf16.msra.mxu0 %v2929_v55  ;;  %1035 = vmatpush1.bf16.msra.mxu1 %v2932_v56  ;;  %v3032_v55 = vld [vmem:[#allocation7 + $0x18c] ss:$16 sps:$4 sm:$0xff]   ;;  %v3027_v56 = vld [vmem:[#allocation7 + $0x180] ss:$16 sps:$4 sm:$0xff]  }
  0xbd   :  { %954 = vmatprep.subr.bf16.mxu0 %v2937_v57  ;;  %1036 = vmatprep.subr.bf16.mxu1 %v2940_v58  ;;  %v3030_v57 = vld [vmem:[#allocation7 + $0x188] ss:$16 sps:$4 sm:$0xff]   ;;  %v3035_v58 = vld [vmem:[#allocation7 + $0x1a4] ss:$16 sps:$4 sm:$0xff]  }
  0xc0   :  { %955 = vmatpush1.bf16.msra.mxu0 %v2935_v59  ;;  %1037 = vmatpush1.bf16.msra.mxu1 %v2938_v60  ;;  %v3038_v59 = vld [vmem:[#allocation7 + $0x1ac] ss:$16 sps:$4 sm:$0xff]   ;;  %v3033_v60 = vld [vmem:[#allocation7 + $0x1a0] ss:$16 sps:$4 sm:$0xff]  }
  0xc1   :  { %956 = vmatprep.subr.bf16.mxu0 %v2943_v61  ;;  %1038 = vmatprep.subr.bf16.mxu1 %v2946_v62  ;;  %v3036_v61 = vld [vmem:[#allocation7 + $0x1a8] ss:$16 sps:$4 sm:$0xff]   ;;  %v3041_v62 = vld [vmem:[#allocation7 + $0x1c4] ss:$16 sps:$4 sm:$0xff]  }
  0xc4   :  { %957 = vmatpush1.bf16.msra.mxu0 %v2941_v63  ;;  %1039 = vmatpush1.bf16.msra.mxu1 %v2944_v0  ;;  %v3044_v63 = vld [vmem:[#allocation7 + $0x1cc] ss:$16 sps:$4 sm:$0xff]   ;;  %v3039_v0 = vld [vmem:[#allocation7 + $0x1c0] ss:$16 sps:$4 sm:$0xff]  }
  0xc5   :  { %958 = vmatprep.subr.bf16.mxu0 %v2949_v1  ;;  %1040 = vmatprep.subr.bf16.mxu1 %v2952_v2  ;;  %v3042_v1 = vld [vmem:[#allocation7 + $0x1c8] ss:$16 sps:$4 sm:$0xff]   ;;  %v3047_v2 = vld [vmem:[#allocation7 + $0x1e4] ss:$16 sps:$4 sm:$0xff]  }
  0xc8   :  { %959 = vmatpush1.bf16.msra.mxu0 %v2947_v3  ;;  %1041 = vmatpush1.bf16.msra.mxu1 %v2950_v4  ;;  %v3050_v3 = vld [vmem:[#allocation7 + $0x1ec] ss:$16 sps:$4 sm:$0xff]   ;;  %v3045_v4 = vld [vmem:[#allocation7 + $0x1e0] ss:$16 sps:$4 sm:$0xff]  }
  0xc9   :  { %1849 = vmatprep.subr.bf16.mxu0 %v2957_v5  ;;  %1931 = vmatprep.subr.bf16.mxu1 %v2960_v6  ;;  %v3048_v5 = vld [vmem:[#allocation7 + $0x1e8] ss:$16 sps:$4 sm:$0xff]   ;;  %v3053_v6 = vld [vmem:[#allocation7 + $0x204] ss:$16 sps:$4 sm:$0xff]  }
  0xcb   :  { %961 = vmatmul.mubr.bf16.vlgmr.msra.gmra.mrb[0].mxu0 %v2391_v9  ;;  %1043 = vmatmul.mubr.bf16.vlgmr.msra.gmra.mrb[0].mxu1 %v2391_v9 }
  0xcc   :  { %1850 = vmatpush1.bf16.msra.mxu0 %v2955_v7  ;;  %1932 = vmatpush1.bf16.msra.mxu1 %v2958_v8  ;;  %v3056_v7 = vld [vmem:[#allocation7 + $0x20c] ss:$16 sps:$4 sm:$0xff]   ;;  %v213_v8 = vlaneseq }
  0xcd   :  { %1851 = vmatprep.subr.bf16.mxu0 %v2963_v10  ;;  %1933 = vmatprep.subr.bf16.mxu1 %v2966_v11  ;;  %v3413_v11 = vld [vmem:[%s3462_s2] sm:$0xf] }
  0xce   :  { %v3407_v9 = vshrl.u32 %v213_v8, 7 }
  0xd0   :  { %1852 = vmatpush1.bf16.msra.mxu0 %v2961_v12  ;;  %1934 = vmatpush1.bf16.msra.mxu1 %v2964_v13  ;;  %v215_v10 = vsub.s32 0, %v3407_v9  ;;  %v219_v12 = vsub.s32 1, %v3407_v9  ;;  %v227_v13 = vsub.s32 3, %v3407_v9 }
  0xd1   :  { %1853 = vmatprep.subr.bf16.mxu0 %v2969_v14  ;;  %1935 = vmatprep.subr.bf16.mxu1 %v2972_v15 }
  0xd2   :  { %v216_v14 = vrot.slane %v3413_v11, %v215_v10  ;;  %v220_v15 = vrot.slane %v3413_v11, %v219_v12 }
  0xd4   :  { %1854 = vmatpush1.bf16.msra.mxu0 %v2967_v16  ;;  %1936 = vmatpush1.bf16.msra.mxu1 %v2970_v17  ;;  %v228_v16 = vrot.slane %v3413_v11, %v227_v13 }
  0xd5   :  { %1855 = vmatprep.subr.bf16.mxu0 %v2975_v18  ;;  %1937 = vmatprep.subr.bf16.mxu1 %v2978_v19 }
  0xd8   :  { %1856 = vmatpush1.bf16.msra.mxu0 %v2973_v20  ;;  %1938 = vmatpush1.bf16.msra.mxu1 %v2976_v21 }
  0xd9   :  { %1857 = vmatprep.subr.bf16.mxu0 %v2981_v22  ;;  %1939 = vmatprep.subr.bf16.mxu1 %v2984_v23 }
  0xdc   :  { %1858 = vmatpush1.bf16.msra.mxu0 %v2979_v24  ;;  %1940 = vmatpush1.bf16.msra.mxu1 %v2982_v25 }
  0xdd   :  { %1859 = vmatprep.subr.bf16.mxu0 %v2987_v26  ;;  %1941 = vmatprep.subr.bf16.mxu1 %v2990_v27 }
  0xe0   :  { %1860 = vmatpush1.bf16.msra.mxu0 %v2985_v28  ;;  %1942 = vmatpush1.bf16.msra.mxu1 %v2988_v29 }
  0xe1   :  { %1861 = vmatprep.subr.bf16.mxu0 %v2993_v30  ;;  %1943 = vmatprep.subr.bf16.mxu1 %v2996_v31 }
  0xe4   :  { %1862 = vmatpush1.bf16.msra.mxu0 %v2991_v32  ;;  %1944 = vmatpush1.bf16.msra.mxu1 %v2994_v33  ;;  %v3051_v32 = vld [vmem:[#allocation7 + $0x200] ss:$16 sps:$4 sm:$0xff]   ;;  %v3054_v33 = vld [vmem:[#allocation7 + $0x208] ss:$16 sps:$4 sm:$0xff]  }
  0xe5   :  { %1863 = vmatprep.subr.bf16.mxu0 %v2999_v34  ;;  %1945 = vmatprep.subr.bf16.mxu1 %v3002_v35  ;;  %v3059_v35 = vld [vmem:[#allocation7 + $0x224] ss:$16 sps:$4 sm:$0xff]  }
  0xe8   :  { %1864 = vmatpush1.bf16.msra.mxu0 %v2997_v36  ;;  %1946 = vmatpush1.bf16.msra.mxu1 %v3000_v37  ;;  %v3062_v36 = vld [vmem:[#allocation7 + $0x22c] ss:$16 sps:$4 sm:$0xff]  }
  0xe9   :  { %1865 = vmatprep.subr.bf16.mxu0 %v3005_v38  ;;  %1947 = vmatprep.subr.bf16.mxu1 %v3008_v39  ;;  %v3057_v38 = vld [vmem:[#allocation7 + $0x220] ss:$16 sps:$4 sm:$0xff]   ;;  %v3060_v39 = vld [vmem:[#allocation7 + $0x228] ss:$16 sps:$4 sm:$0xff]  }
  0xec   :  { %1866 = vmatpush1.bf16.msra.mxu0 %v3003_v40  ;;  %1948 = vmatpush1.bf16.msra.mxu1 %v3006_v41  ;;  %v3065_v40 = vld [vmem:[#allocation7 + $0x244] ss:$16 sps:$4 sm:$0xff]   ;;  %v3068_v41 = vld [vmem:[#allocation7 + $0x24c] ss:$16 sps:$4 sm:$0xff]  }
  0xed   :  { %1867 = vmatprep.subr.bf16.mxu0 %v3011_v42  ;;  %1949 = vmatprep.subr.bf16.mxu1 %v3014_v43  ;;  %v3063_v42 = vld [vmem:[#allocation7 + $0x240] ss:$16 sps:$4 sm:$0xff]   ;;  %v3066_v43 = vld [vmem:[#allocation7 + $0x248] ss:$16 sps:$4 sm:$0xff]  }
  0xf0   :  { %1868 = vmatpush1.bf16.msra.mxu0 %v3009_v44  ;;  %1950 = vmatpush1.bf16.msra.mxu1 %v3012_v45  ;;  %v3071_v44 = vld [vmem:[#allocation7 + $0x264] ss:$16 sps:$4 sm:$0xff]   ;;  %v3074_v45 = vld [vmem:[#allocation7 + $0x26c] ss:$16 sps:$4 sm:$0xff]  }
  0xf1   :  { %1869 = vmatprep.subr.bf16.mxu0 %v3017_v46  ;;  %1951 = vmatprep.subr.bf16.mxu1 %v3020_v47  ;;  %v3069_v46 = vld [vmem:[#allocation7 + $0x260] ss:$16 sps:$4 sm:$0xff]   ;;  %v3072_v47 = vld [vmem:[#allocation7 + $0x268] ss:$16 sps:$4 sm:$0xff]  }
  0xf4   :  { %1870 = vmatpush1.bf16.msra.mxu0 %v3015_v48  ;;  %1952 = vmatpush1.bf16.msra.mxu1 %v3018_v49  ;;  %v3077_v48 = vld [vmem:[#allocation7 + $0x284] ss:$16 sps:$4 sm:$0xff]   ;;  %v3080_v49 = vld [vmem:[#allocation7 + $0x28c] ss:$16 sps:$4 sm:$0xff]  }
  0xf5   :  { %1871 = vmatprep.subr.bf16.mxu0 %v3023_v50  ;;  %1953 = vmatprep.subr.bf16.mxu1 %v3026_v51  ;;  %v3075_v50 = vld [vmem:[#allocation7 + $0x280] ss:$16 sps:$4 sm:$0xff]   ;;  %v3078_v51 = vld [vmem:[#allocation7 + $0x288] ss:$16 sps:$4 sm:$0xff]  }
  0xf8   :  { %1872 = vmatpush1.bf16.msra.mxu0 %v3021_v52  ;;  %1954 = vmatpush1.bf16.msra.mxu1 %v3024_v53  ;;  %v3083_v52 = vld [vmem:[#allocation7 + $0x2a4] ss:$16 sps:$4 sm:$0xff]   ;;  %v3086_v53 = vld [vmem:[#allocation7 + $0x2ac] ss:$16 sps:$4 sm:$0xff]  }
  0xf9   :  { %1873 = vmatprep.subr.bf16.mxu0 %v3029_v54  ;;  %1955 = vmatprep.subr.bf16.mxu1 %v3032_v55  ;;  %v3081_v54 = vld [vmem:[#allocation7 + $0x2a0] ss:$16 sps:$4 sm:$0xff]   ;;  %v3084_v55 = vld [vmem:[#allocation7 + $0x2a8] ss:$16 sps:$4 sm:$0xff]  }
  0xfc   :  { %1874 = vmatpush1.bf16.msra.mxu0 %v3027_v56  ;;  %1956 = vmatpush1.bf16.msra.mxu1 %v3030_v57  ;;  %v3089_v56 = vld [vmem:[#allocation7 + $0x2c4] ss:$16 sps:$4 sm:$0xff]   ;;  %v3092_v57 = vld [vmem:[#allocation7 + $0x2cc] ss:$16 sps:$4 sm:$0xff]  }
  0xfd   :  { %1875 = vmatprep.subr.bf16.mxu0 %v3035_v58  ;;  %1957 = vmatprep.subr.bf16.mxu1 %v3038_v59  ;;  %v3087_v58 = vld [vmem:[#allocation7 + $0x2c0] ss:$16 sps:$4 sm:$0xff]   ;;  %v3090_v59 = vld [vmem:[#allocation7 + $0x2c8] ss:$16 sps:$4 sm:$0xff]  }
 0x100   :  { %1876 = vmatpush1.bf16.msra.mxu0 %v3033_v60  ;;  %1958 = vmatpush1.bf16.msra.mxu1 %v3036_v61  ;;  %v3095_v60 = vld [vmem:[#allocation7 + $0x2e4] ss:$16 sps:$4 sm:$0xff]   ;;  %v3098_v61 = vld [vmem:[#allocation7 + $0x2ec] ss:$16 sps:$4 sm:$0xff]  }
 0x101   :  { %1877 = vmatprep.subr.bf16.mxu0 %v3041_v62  ;;  %1959 = vmatprep.subr.bf16.mxu1 %v3044_v63  ;;  %v3093_v62 = vld [vmem:[#allocation7 + $0x2e0] ss:$16 sps:$4 sm:$0xff]   ;;  %v3096_v63 = vld [vmem:[#allocation7 + $0x2e8] ss:$16 sps:$4 sm:$0xff]  }
 0x104   :  { %1878 = vmatpush1.bf16.msra.mxu0 %v3039_v0  ;;  %1960 = vmatpush1.bf16.msra.mxu1 %v3042_v1  ;;  %v3101_v0 = vld [vmem:[#allocation7 + $0x304] ss:$16 sps:$4 sm:$0xff]   ;;  %v3104_v1 = vld [vmem:[#allocation7 + $0x30c] ss:$16 sps:$4 sm:$0xff]  }
 0x105   :  { %1879 = vmatprep.subr.bf16.mxu0 %v3047_v2  ;;  %1961 = vmatprep.subr.bf16.mxu1 %v3050_v3  ;;  %v3099_v2 = vld [vmem:[#allocation7 + $0x300] ss:$16 sps:$4 sm:$0xff]   ;;  %v3102_v3 = vld [vmem:[#allocation7 + $0x308] ss:$16 sps:$4 sm:$0xff]  }
 0x108   :  { %1880 = vmatpush1.bf16.msra.mxu0 %v3045_v4  ;;  %1962 = vmatpush1.bf16.msra.mxu1 %v3048_v5  ;;  %v3107_v4 = vld [vmem:[#allocation7 + $0x324] ss:$16 sps:$4 sm:$0xff]   ;;  %v3110_v5 = vld [vmem:[#allocation7 + $0x32c] ss:$16 sps:$4 sm:$0xff]  }
 0x109   :  { %1890 = vmatprep.subr.bf16.mxu0 %v3053_v6  ;;  %1972 = vmatprep.subr.bf16.mxu1 %v3056_v7  ;;  %v3105_v6 = vld [vmem:[#allocation7 + $0x320] ss:$16 sps:$4 sm:$0xff]   ;;  %v3108_v7 = vld [vmem:[#allocation7 + $0x328] ss:$16 sps:$4 sm:$0xff]  }
 0x19e   :  { %v962_v17 = vpop.f32.mrb[0].mxu0  ;;  %v3426_v18 = vpop.f32.mrb[0].mxu1 }
 0x19f   :  { %v2726_v19 = vadd.f32 %v962_v17, %v216_v14  ;;  %v964_v20 = vpop.f32.mrb[1].mxu0  ;;  %v1046_v21 = vpop.f32.mrb[1].mxu1  ;;  %v3113_v14 = vld [vmem:[#allocation7 + $0x344] ss:$16 sps:$4 sm:$0xff]   ;;  %v3114_v17 = vld [vmem:[#allocation7 + $0x348] ss:$16 sps:$4 sm:$0xff]  }
 0x1a0   :  { %v2727_v22 = vadd.f32 %v964_v20, %v220_v15  ;;  %v2729_v23 = vadd.f32 %v1046_v21, %v228_v16  ;;  %v966_v24 = vpop.f32.mrb[2].mxu0  ;;  %v1048_v25 = vpop.f32.mrb[2].mxu1  ;;  %v3116_v15 = vld [vmem:[#allocation7 + $0x34c] ss:$16 sps:$4 sm:$0xff]   ;;  %v3111_v16 = vld [vmem:[#allocation7 + $0x340] ss:$16 sps:$4 sm:$0xff]  }
 0x1a1   :  { %v1051_v26 = vmax.f32 %v2726_v19, 0.0  ;;  %v967_v27 = vpop.f32.mrb[3].mxu0  ;;  %v1049_v28 = vpop.f32.mrb[3].mxu1  ;;  %v3119_v19 = vld [vmem:[#allocation7 + $0x364] ss:$16 sps:$4 sm:$0xff]  }
 0x1a2   :  { %v1052_v29 = vmax.f32 %v2727_v22, 0.0  ;;  %v1054_v30 = vmax.f32 %v2729_v23, 0.0  ;;  %v3122_v20 = vld [vmem:[#allocation7 + $0x36c] ss:$16 sps:$4 sm:$0xff]   ;;  %v3117_v21 = vld [vmem:[#allocation7 + $0x360] ss:$16 sps:$4 sm:$0xff]  }
 0x1a3   :  { %v1055_v34 = vpack.c.bf16 %v1051_v26, %v1051_v26  ;;  %v3120_v22 = vld [vmem:[#allocation7 + $0x368] ss:$16 sps:$4 sm:$0xff]   ;;  %v3125_v23 = vld [vmem:[#allocation7 + $0x384] ss:$16 sps:$4 sm:$0xff]   ;;  %v3128_v24 = vld [vmem:[#allocation7 + $0x38c] ss:$16 sps:$4 sm:$0xff]  }
 0x1a4   :  { %v1056_v31 = vpack.c.bf16 %v1052_v29, %v1052_v29  ;;  %v1058_v37 = vpack.c.bf16 %v1054_v30, %v1054_v30  ;;  %v3123_v25 = vld [vmem:[#allocation7 + $0x380] ss:$16 sps:$4 sm:$0xff]   ;;  %v3126_v26 = vld [vmem:[#allocation7 + $0x388] ss:$16 sps:$4 sm:$0xff]   ;;  %v223_v27 = vsub.s32 2, %v3407_v9 }
 0x1a5   :  { %v3131_v28 = vld [vmem:[#allocation7 + $0x3a4] ss:$16 sps:$4 sm:$0xff]   ;;  %v3134_v29 = vld [vmem:[#allocation7 + $0x3ac] ss:$16 sps:$4 sm:$0xff]   ;;  %v3129_v30 = vld [vmem:[#allocation7 + $0x3a0] ss:$16 sps:$4 sm:$0xff]  }
 0x1a6   :  { %1881 = vmatprep.mubr.bf16.mxu0 %v1056_v31  ;;  %1963 = vmatprep.mubr.bf16.mxu1 %v1056_v31  ;;  %v3132_v31 = vld [vmem:[#allocation7 + $0x3a8] ss:$16 sps:$4 sm:$0xff]  }
 0x1a7   :  { %1882 = vmatmul.mubr.bf16.vlgmr.msra.gmra.mrb[4].mxu0 %v1055_v34  ;;  %1964 = vmatmul.mubr.bf16.vlgmr.msra.gmra.mrb[4].mxu1 %v1055_v34  ;;  %v3140_v34 = vld [vmem:[#allocation7 + $0x3cc] ss:$16 sps:$4 sm:$0xff]  }
 0x1a8   :  { %1891 = vmatpush1.bf16.msra.mxu0 %v3051_v32  ;;  %1973 = vmatpush1.bf16.msra.mxu1 %v3054_v33  ;;  %v224_v32 = vrot.slane %v3413_v11, %v223_v27  ;;  %v3137_v33 = vld [vmem:[#allocation7 + $0x3c4] ss:$16 sps:$4 sm:$0xff]  }
 0x1a9   :  { %1922 = vmatprep.mubr.bf16.mxu0 %v1058_v37  ;;  %2004 = vmatprep.mubr.bf16.mxu1 %v1058_v37  ;;  %v3147_v11 = vld [vmem:[#allocation8 + $0x40] sm:$0xff]  }
 0x1aa   :  { %1892 = vmatprep.subr.bf16.mxu0 %v3059_v35  ;;  %1974 = vmatprep.subr.bf16.mxu1 %v3062_v36  ;;  %v3135_v35 = vld [vmem:[#allocation7 + $0x3c0] ss:$16 sps:$4 sm:$0xff]   ;;  %v3138_v36 = vld [vmem:[#allocation7 + $0x3c8] ss:$16 sps:$4 sm:$0xff]   ;;  %v2728_v37 = vadd.f32 %v3426_v18, %v224_v32 }
 0x1ab   :  { %v3151_v18 = vld [vmem:[#allocation8 + $0x48] sm:$0xff]  }
 0x1ac   :  { %1893 = vmatpush1.bf16.msra.mxu0 %v3057_v38  ;;  %1975 = vmatpush1.bf16.msra.mxu1 %v3060_v39  ;;  %v3143_v38 = vld [vmem:[#allocation7 + $0x3e4] ss:$16 sps:$4 sm:$0xff]   ;;  %v3146_v39 = vld [vmem:[#allocation7 + $0x3ec] ss:$16 sps:$4 sm:$0xff]  }
 0x1ad   :  { %1894 = vmatprep.subr.bf16.mxu0 %v3065_v40  ;;  %1976 = vmatprep.subr.bf16.mxu1 %v3068_v41  ;;  %v3141_v40 = vld [vmem:[#allocation7 + $0x3e0] ss:$16 sps:$4 sm:$0xff]   ;;  %v3144_v41 = vld [vmem:[#allocation7 + $0x3e8] ss:$16 sps:$4 sm:$0xff]  }
 0x1b0   :  { %1895 = vmatpush1.bf16.msra.mxu0 %v3063_v42  ;;  %1977 = vmatpush1.bf16.msra.mxu1 %v3066_v43  ;;  %v1053_v42 = vmax.f32 %v2728_v37, 0.0  ;;  %v3148_v43 = vld [vmem:[#allocation8 + $0xc0] sm:$0xff]  }
 0x1b1   :  { %1896 = vmatprep.subr.bf16.mxu0 %v3071_v44  ;;  %1978 = vmatprep.subr.bf16.mxu1 %v3074_v45  ;;  %v3149_v44 = vld [vmem:[#allocation8] sm:$0xff]  }
 0x1b2   :  { %v3150_v45 = vld [vmem:[#allocation8 + $0x80] sm:$0xff]  }
 0x1b4   :  { %1897 = vmatpush1.bf16.msra.mxu0 %v3069_v46  ;;  %1979 = vmatpush1.bf16.msra.mxu1 %v3072_v47  ;;  %v1057_v46 = vpack.c.bf16 %v1053_v42, %v1053_v42  ;;  %v3152_v47 = vld [vmem:[#allocation8 + $0xc8] sm:$0xff]  }
 0x1b5   :  { %1898 = vmatprep.subr.bf16.mxu0 %v3077_v48  ;;  %1980 = vmatprep.subr.bf16.mxu1 %v3080_v49  ;;  %v3153_v48 = vld [vmem:[#allocation8 + $0x8] sm:$0xff]  }
 0x1b6   :  { %v3154_v49 = vld [vmem:[#allocation8 + $0x88] sm:$0xff]  }
 0x1b8   :  { %1899 = vmatpush1.bf16.msra.mxu0 %v3075_v50  ;;  %1981 = vmatpush1.bf16.msra.mxu1 %v3078_v51  ;;  %v3155_v50 = vld [vmem:[#allocation8 + $0x50] sm:$0xff]  }
 0x1b9   :  { %1900 = vmatprep.subr.bf16.mxu0 %v3083_v52  ;;  %1982 = vmatprep.subr.bf16.mxu1 %v3086_v53  ;;  %v3156_v51 = vld [vmem:[#allocation8 + $0xd0] sm:$0xff]  }
 0x1ba   :  { %v3157_v52 = vld [vmem:[#allocation8 + $0x10] sm:$0xff]  }
 0x1bb   :  { %v3158_v53 = vld [vmem:[#allocation8 + $0x90] sm:$0xff]  }
 0x1bc   :  { %1901 = vmatpush1.bf16.msra.mxu0 %v3081_v54  ;;  %1983 = vmatpush1.bf16.msra.mxu1 %v3084_v55  ;;  %v3159_v54 = vld [vmem:[#allocation8 + $0x58] sm:$0xff]  }
 0x1bd   :  { %1902 = vmatprep.subr.bf16.mxu0 %v3089_v56  ;;  %1984 = vmatprep.subr.bf16.mxu1 %v3092_v57  ;;  %v3160_v55 = vld [vmem:[#allocation8 + $0xd8] sm:$0xff]  }
 0x1be   :  { %v3161_v56 = vld [vmem:[#allocation8 + $0x18] sm:$0xff]  }
 0x1bf   :  { %v3162_v57 = vld [vmem:[#allocation8 + $0x98] sm:$0xff]  }
 0x1c0   :  { %1903 = vmatpush1.bf16.msra.mxu0 %v3087_v58  ;;  %1985 = vmatpush1.bf16.msra.mxu1 %v3090_v59  ;;  %v3163_v58 = vld [vmem:[#allocation8 + $0x60] sm:$0xff]  }
 0x1c1   :  { %1904 = vmatprep.subr.bf16.mxu0 %v3095_v60  ;;  %1986 = vmatprep.subr.bf16.mxu1 %v3098_v61  ;;  %v3164_v59 = vld [vmem:[#allocation8 + $0xe0] sm:$0xff]  }
 0x1c2   :  { %v3165_v60 = vld [vmem:[#allocation8 + $0x20] sm:$0xff]  }
 0x1c3   :  { %v3166_v61 = vld [vmem:[#allocation8 + $0xa0] sm:$0xff]  }
 0x1c4   :  { %1905 = vmatpush1.bf16.msra.mxu0 %v3093_v62  ;;  %1987 = vmatpush1.bf16.msra.mxu1 %v3096_v63  ;;  %v3167_v62 = vld [vmem:[#allocation8 + $0x68] sm:$0xff]  }
 0x1c5   :  { %1906 = vmatprep.subr.bf16.mxu0 %v3101_v0  ;;  %1988 = vmatprep.subr.bf16.mxu1 %v3104_v1  ;;  %v3168_v63 = vld [vmem:[#allocation8 + $0xe8] sm:$0xff]  }
 0x1c6   :  { %v3169_v0 = vld [vmem:[#allocation8 + $0x28] sm:$0xff]  }
 0x1c7   :  { %v3170_v1 = vld [vmem:[#allocation8 + $0xa8] sm:$0xff]  }
 0x1c8   :  { %1907 = vmatpush1.bf16.msra.mxu0 %v3099_v2  ;;  %1989 = vmatpush1.bf16.msra.mxu1 %v3102_v3  ;;  %v3171_v2 = vld [vmem:[#allocation8 + $0x70] sm:$0xff]  }
 0x1c9   :  { %1908 = vmatprep.subr.bf16.mxu0 %v3107_v4  ;;  %1990 = vmatprep.subr.bf16.mxu1 %v3110_v5  ;;  %v3172_v3 = vld [vmem:[#allocation8 + $0xf0] sm:$0xff]  }
 0x1ca   :  { %v3173_v4 = vld [vmem:[#allocation8 + $0x30] sm:$0xff]  }
 0x1cb   :  { %v3174_v5 = vld [vmem:[#allocation8 + $0xb0] sm:$0xff]  }
 0x1cc   :  { %1909 = vmatpush1.bf16.msra.mxu0 %v3105_v6  ;;  %1991 = vmatpush1.bf16.msra.mxu1 %v3108_v7  ;;  %v3175_v6 = vld [vmem:[#allocation8 + $0x78] sm:$0xff]  }
 0x1cd   :  { %1910 = vmatprep.subr.bf16.mxu0 %v3113_v14  ;;  %1992 = vmatprep.subr.bf16.mxu1 %v3116_v15  ;;  %v3176_v7 = vld [vmem:[#allocation8 + $0xf8] sm:$0xff]  }
 0x1ce   :  { %v3177_v14 = vld [vmem:[#allocation8 + $0x38] sm:$0xff]  }
 0x1cf   :  { %v3178_v15 = vld [vmem:[#allocation8 + $0xb8] sm:$0xff]  }
 0x1d0   :  { %1911 = vmatpush1.bf16.msra.mxu0 %v3111_v16  ;;  %1993 = vmatpush1.bf16.msra.mxu1 %v3114_v17  ;;  %v1187_v16 = vld [vmem:[%s3464_s4] sm:$0xf] }
 0x1d1   :  { %1912 = vmatprep.subr.bf16.mxu0 %v3119_v19  ;;  %1994 = vmatprep.subr.bf16.mxu1 %v3122_v20  ;;  %v1192_v17 = vrot.slane %v1187_v16, %v215_v10  ;;  %v1200_v19 = vrot.slane %v1187_v16, %v223_v27  ;;  %v1196_v20 = vrot.slane %v1187_v16, %v219_v12 }
 0x1d4   :  { %1913 = vmatpush1.bf16.msra.mxu0 %v3117_v21  ;;  %1995 = vmatpush1.bf16.msra.mxu1 %v3120_v22  ;;  %v1204_v21 = vrot.slane %v1187_v16, %v227_v13 }
 0x1d5   :  { %1914 = vmatprep.subr.bf16.mxu0 %v3125_v23  ;;  %1996 = vmatprep.subr.bf16.mxu1 %v3128_v24 }
 0x1d8   :  { %1915 = vmatpush1.bf16.msra.mxu0 %v3123_v25  ;;  %1997 = vmatpush1.bf16.msra.mxu1 %v3126_v26 }
 0x1d9   :  { %1916 = vmatprep.subr.bf16.mxu0 %v3131_v28  ;;  %1998 = vmatprep.subr.bf16.mxu1 %v3134_v29 }
 0x1dc   :  { %1917 = vmatpush1.bf16.msra.mxu0 %v3129_v30  ;;  %1999 = vmatpush1.bf16.msra.mxu1 %v3132_v31 }
 0x1dd   :  { %1918 = vmatprep.subr.bf16.mxu0 %v3137_v33  ;;  %2000 = vmatprep.subr.bf16.mxu1 %v3140_v34 }
 0x1e0   :  { %1919 = vmatpush1.bf16.msra.mxu0 %v3135_v35  ;;  %2001 = vmatpush1.bf16.msra.mxu1 %v3138_v36 }
 0x1e1   :  { %1920 = vmatprep.subr.bf16.mxu0 %v3143_v38  ;;  %2002 = vmatprep.subr.bf16.mxu1 %v3146_v39 }
 0x1e4   :  { %1921 = vmatpush1.bf16.msra.mxu0 %v3141_v40  ;;  %2003 = vmatpush1.bf16.msra.mxu1 %v3144_v41  ;;  %v2649_v40 = vld [vmem:[%s3466_s6] ss:$0 sm:$0xff]  ;;  %s3267_s6 = scalar_lea.vmem %s2379_s30, 64 }
 0x1e5   :  { %2682 = vmatprep.subr.bf16.mxu0 %v3147_v11  ;;  %2704 = vmatprep.subr.bf16.mxu1 %v3148_v43  ;;  %p3268_p4 = scmp.ne.s32.totalorder %s2379_s30, %s3267_s6  ;;  %p3273_p6 = scmp.lt.s32.totalorder %s3267_s6, %s3267_s6 }
 0x1e7   :  { %1923 = vmatmul.mubr.bf16.vlgmr.msra.gmra.mrb[4].mxu0 %v1057_v46  ;;  %2005 = vmatmul.mubr.bf16.vlgmr.msra.gmra.mrb[4].mxu1 %v1057_v46  ;;  %p3274_p7 = por %p3273_p6, %p3272_p5 }
 0x1e8   :  { %2683 = vmatpush3.bf16.msra.mxu0 %v3149_v44  ;;  %2705 = vmatpush3.bf16.msra.mxu1 %v3150_v45 }
 0x1e9   :  { %2684 = vmatprep.subr.bf16.mxu0 %v3151_v18  ;;  %2706 = vmatprep.subr.bf16.mxu1 %v3152_v47  ;;  %p3275_p8 = pnand %p3274_p7, %p3268_p4 }
 0x1ec   :  { %2685 = vmatpush3.bf16.msra.mxu0 %v3153_v48  ;;  %2707 = vmatpush3.bf16.msra.mxu1 %v3154_v49  ;;  %v2365_v48 = vand.u32 127, %v213_v8 }
 0x1ed   :  { %2686 = vmatprep.subr.bf16.mxu0 %v3155_v50  ;;  %2708 = vmatprep.subr.bf16.mxu1 %v3156_v51 }
 0x1ee   :  { %vm2366_vm0 = vcmp.ge.s32.totalorder %v2365_v48, 2 }
 0x1f0   :  { %2687 = vmatpush3.bf16.msra.mxu0 %v3157_v52  ;;  %2709 = vmatpush3.bf16.msra.mxu1 %v3158_v53 }
 0x1f1   :  { %2688 = vmatprep.subr.bf16.mxu0 %v3159_v54  ;;  %2710 = vmatprep.subr.bf16.mxu1 %v3160_v55 }
 0x1f4   :  { %2689 = vmatpush3.bf16.msra.mxu0 %v3161_v56  ;;  %2711 = vmatpush3.bf16.msra.mxu1 %v3162_v57 }
 0x1f5   :  { %2690 = vmatprep.subr.bf16.mxu0 %v3163_v58  ;;  %2712 = vmatprep.subr.bf16.mxu1 %v3164_v59 }
 0x1f8   :  { %2691 = vmatpush3.bf16.msra.mxu0 %v3165_v60  ;;  %2713 = vmatpush3.bf16.msra.mxu1 %v3166_v61 }
 0x1f9   :  { %2692 = vmatprep.subr.bf16.mxu0 %v3167_v62  ;;  %2714 = vmatprep.subr.bf16.mxu1 %v3168_v63 }
 0x1fc   :  { %2693 = vmatpush3.bf16.msra.mxu0 %v3169_v0  ;;  %2715 = vmatpush3.bf16.msra.mxu1 %v3170_v1 }
 0x1fd   :  { %2694 = vmatprep.subr.bf16.mxu0 %v3171_v2  ;;  %2716 = vmatprep.subr.bf16.mxu1 %v3172_v3 }
 0x200   :  { %2695 = vmatpush3.bf16.msra.mxu0 %v3173_v4  ;;  %2717 = vmatpush3.bf16.msra.mxu1 %v3174_v5 }
 0x201   :  { %2696 = vmatprep.subr.bf16.mxu0 %v3175_v6  ;;  %2718 = vmatprep.subr.bf16.mxu1 %v3176_v7 }
 0x204   :  { %2697 = vmatpush3.bf16.msra.mxu0 %v3177_v14  ;;  %2719 = vmatpush3.bf16.msra.mxu1 %v3178_v15 }
 0x2ba   :  { %v1924_v22 = vpop.f32.mrb[4].mxu0  ;;  %v2006_v23 = vpop.f32.mrb[4].mxu1 }
 0x2bb   :  { %v2730_v24 = vadd.f32 %v1924_v22, %v1192_v17  ;;  %v2732_v25 = vadd.f32 %v2006_v23, %v1200_v19  ;;  %v1926_v26 = vpop.f32.mrb[5].mxu0  ;;  %v2008_v28 = vpop.f32.mrb[5].mxu1 }
 0x2bc   :  { %v2731_v29 = vadd.f32 %v1926_v26, %v1196_v20  ;;  %v2733_v30 = vadd.f32 %v2008_v28, %v1204_v21  ;;  %v1928_v31 = vpop.f32.mrb[6].mxu0  ;;  %v2010_v32 = vpop.f32.mrb[6].mxu1 }
 0x2bd   :  { %v2013_v10 = vmax.f32 %v2730_v24, 0.0  ;;  %v2015_v33 = vmax.f32 %v2732_v25, 0.0  ;;  %v1929_v34 = vpop.f32.mrb[7].mxu0  ;;  %v2011_v27 = vpop.f32.mrb[7].mxu1 }
 0x2be   :  { %v2014_v35 = vmax.f32 %v2731_v29, 0.0  ;;  %v2016_v36 = vmax.f32 %v2733_v30, 0.0 }
 0x2bf   :  { %v2017_v9 = vpack.c.bf16 %v2013_v10, %v2013_v10  ;;  %v2019_v13 = vpack.c.bf16 %v2015_v33, %v2015_v33 }
 0x2c0   :  { %v2018_v12 = vpack.c.bf16 %v2014_v35, %v2014_v35  ;;  %v2020_v37 = vpack.c.bf16 %v2016_v36, %v2016_v36 }
 0x2c2   :  { %2316 = vmatprep.mubr.bf16.mxu0 %v2018_v12  ;;  %2356 = vmatprep.mubr.bf16.mxu1 %v2020_v37 }
 0x2c3   :  { %2317 = vmatmul.mubr.bf16.vlgmr.msra.gmra.mrb[8].mxu0 %v2017_v9  ;;  %2357 = vmatmul.mubr.bf16.vlgmr.msra.gmra.mrb[8].mxu1 %v2019_v13 }
 0x396   :  { %v2698_v38 = vpop.f32.mrb[8].mxu0  ;;  %v2720_v39 = vpop.f32.mrb[8].mxu1 }
 0x397   :  { %v2699_v41 = vpop.f32.mrb[9].mxu0  ;;  %v2721_v42 = vpop.f32.mrb[9].mxu1 }
 0x398   :  { %v2700_v11 = vadd.f32 %v2699_v41, %v2698_v38  ;;  %v2722_v43 = vadd.f32 %v2721_v42, %v2720_v39  ;;  %v2701_v44 = vpop.f32.mrb[10].mxu0  ;;  %v2723_v45 = vpop.f32.mrb[10].mxu1 }
 0x399   :  { %v2702_v46 = vpop.f32.mrb[11].mxu0  ;;  %v2724_v18 = vpop.f32.mrb[11].mxu1 }
 0x39a   :  { %v2319_v47 = vadd.f32 %v2700_v11, %v2649_v40 }
 0x39c   :  { %v2359_v49 = vadd.f32 %v2722_v43, %v2319_v47 }
 0x39e   :  { %v2367_v50 = vmax.f32 %v2359_v49, -20.0 }
 0x3a0   :  { %v2368_v51 = vmin.f32 %v2367_v50, 2.0 }
 0x3a2   :  { %v2369_v52 = vsel %vm2366_vm0, %v2368_v51, %v2359_v49 }
 0x3a3   :  { %v2370_v53 = vpack.c.bf16 %v2369_v52, %v2369_v52 }
 0x3a5   :  { %2371 = vst [vmem:[#allocation10] sm:$0xf] %v2370_v53 }
 0x3a6   :  { %3278 = shalt.err (!%p3275_p8)
}
 0x3a7   :  { %s3279_s10 = scalar_lea.hbm %s3467_s7, 64 }
 0x3a8   :  { %p3280_p9 = scmp.ne.s32.totalorder %s3467_s7, %s3279_s10  ;;  %p3283_p10 = scmp.lt.u32.totalorder %s3279_s10, %s3467_s7 }
 0x3aa   :  { %p3285_p11 = pnand %p3283_p10, %p3280_p9 }
 0x3ac   :  { %3288 = shalt.err (!%p3285_p11)
}
 0x3ad   :  { %2381 = dma.vmem_to_hbm [thread:$0]  %s2379_s30, 64, %s3467_s7, [#allocation4]  }
 0x3ae   :  { %3295 = dma.done.wait [#allocation4], 64  }
 0x3af   :  { %3296 = vsyncadd [#allocation4], 4294967232 }
 0x3b0   :  { %2385 = vsyncpa [#allocation3], 1 }
 0x3b1   :  { %2386 = vsyncpa [#allocation6], 1 }
 0x3b2   :  { %2387 = vsyncpa [#allocation9], 1 }
 0x3b3   :  { %2388 = vsyncpa [#allocation4], 1 }

</bundles_post_ra>
